<compile_context>
chip_gen: v7x
topology: tpu7x:2x2x1
jax: 0.10.0
libtpu: 0.0.40
codegen_flags: <defaults>
</compile_context>

<pallas_src>
import functools

import jax
import jax.numpy as jnp
from jax.experimental import pallas as pl
from jax.experimental.pallas import tpu as pltpu


def _round_up(x: int, m: int) -> int:
    return ((x + m - 1) // m) * m


def _device_kind() -> str:
    try:
        return jax.devices()[0].device_kind.lower()
    except Exception:
        return ""


def _vmem_budget_bytes() -> int:
    # v7x: 64 MiB physical VMEM per TC -> leave compiler/internal-scratch headroom.
    # v5e/v6e: 128 MiB physical -> allow large resident W / bigger batch tiles.
    return (48 << 20) if "v7" in _device_kind() else (100 << 20)


def _gibbs_step(v, u, wt, w, hb, vb, out_dtype):
    """v -> h -> v' with h ~ Bernoulli(sigmoid(v @ W^T + hb)); returns prob_v."""
    # v: (TB, Vp) bf16, wt: (Vp, Hp) bf16, w: (Hp, Vp) bf16, u: (TB, Hp) f32 in [0,1).
    logits_h = jax.lax.dot_general(
        v, wt, dimension_numbers=(((1,), (0,)), ((), ())),
        preferred_element_type=jnp.float32) + hb                 # (TB, Hp) f32
    prob_h = jax.nn.sigmoid(logits_h)
    h_sample = (u < prob_h).astype(jnp.bfloat16)                 # exact {0, 1}
    logits_v = jax.lax.dot_general(
        h_sample, w, dimension_numbers=(((1,), (0,)), ((), ())),
        preferred_element_type=jnp.float32) + vb                 # (TB, Vp) f32
    return jax.nn.sigmoid(logits_v).astype(out_dtype)


def _rbm_kernel_prng(seed_ref, v_ref, wt_ref, w_ref, hb_ref, vb_ref, out_ref):
    """Primary path: uniforms from the in-kernel hardware PRNG (no HBM stream)."""
    tb = v_ref.shape[0]
    hp = hb_ref.shape[-1]
    # Distinct stream per batch tile; same seed -> same samples (deterministic).
    pltpu.prng_seed(seed_ref[0] + pl.program_id(0))
    raw = pltpu.prng_random_bits((tb, hp))
    if raw.dtype != jnp.int32:
        raw = pltpu.bitcast(raw, jnp.int32)
    bits = raw & ((1 << 23) - 1)                                  # 23 random bits >= enough
    u = bits.astype(jnp.float32) * (1.0 / (1 << 23))              # uniform in [0, 1)
    out_ref[...] = _gibbs_step(v_ref[...], u, wt_ref[...], w_ref[...],
                               hb_ref[...], vb_ref[...], out_ref.dtype)


def _rbm_kernel_hostu(v_ref, u_ref, wt_ref, w_ref, hb_ref, vb_ref, out_ref):
    """Fallback path: bf16 uniforms streamed from HBM (interpret / non-TPU safety net)."""
    u = u_ref[...].astype(jnp.float32)
    out_ref[...] = _gibbs_step(v_ref[...], u, wt_ref[...], w_ref[...],
                               hb_ref[...], vb_ref[...], out_ref.dtype)


@functools.partial(
    jax.jit,
    static_argnames=("block_batch", "out_dtype", "use_device_prng",
                     "single_buffer_invariants"))
def rbm_forward(v, W, h_bias, v_bias, seed, *, block_batch: int = 256,
                out_dtype=jnp.float32, use_device_prng: bool = True,
                single_buffer_invariants: bool = True):
    """One Gibbs step (v -> h -> v'); returns prob_v (matches RBM.forward).

    v: [B, V] (features ++ one-hot labels), W: [H, V], h_bias: [H], v_bias: [V],
    seed: int32 scalar controlling the Bernoulli draw of h.
    """
    B, V = v.shape
    H = W.shape[0]
    assert W.shape[1] == V

    # ---- TPU-friendly padding: lane dim multiple of 128, batch tile multiple of 8 ----
    Vp = _round_up(V, 128)
    Hp = _round_up(H, 128)
    TB = _round_up(min(block_batch, _round_up(B, 8)), 8)
    Bp = _round_up(B, TB)

    # On v7x (2 TensorCores) make sure big batches split into >= 2 "parallel" grid
    # steps so both cores get work; tiny batches stay a single step (lower overhead).
    if "v7" in _device_kind() and Bp // TB < 2 and Bp >= 256:
        TB = _round_up(Bp // 2, 8)
        Bp = _round_up(B, TB)

    grid = (Bp // TB,)

    # ---- padded operands; matmul operands bf16 (MXU-native), f32 accumulate ----
    v_p = jnp.zeros((Bp, Vp), jnp.bfloat16).at[:B, :V].set(v.astype(jnp.bfloat16))
    w_p = jnp.zeros((Hp, Vp), jnp.bfloat16).at[:H, :V].set(W.astype(jnp.bfloat16))
    wt_p = jnp.transpose(w_p)                    # (Vp, Hp): MXU-native for v @ W^T
    hb_p = jnp.zeros((1, Hp), jnp.float32).at[0, :H].set(
        h_bias.reshape(-1).astype(jnp.float32))
    vb_p = jnp.zeros((1, Vp), jnp.float32).at[0, :V].set(
        v_bias.reshape(-1).astype(jnp.float32))

    # ---- BlockSpecs ----
    def _res(shape, index_map):
        """Grid-invariant operand: constant index_map, optionally single-buffered."""
        if single_buffer_invariants:
            return pl.BlockSpec(shape, index_map,
                                pipeline_mode=pl.Buffered(buffer_count=1))
        return pl.BlockSpec(shape, index_map)

    # ---- VMEM budget (generation-aware clamp) ----
    out_itemsize = jnp.dtype(out_dtype).itemsize
    inv_copies = 1 if single_buffer_invariants else 2
    w_bytes = inv_copies * (2 * Hp * Vp * 2)                         # W + W^T (bf16)
    bias_bytes = inv_copies * (Hp + Vp) * 4
    tile_bytes = 2 * (TB * Vp * 2) + 2 * (TB * Vp * out_itemsize)    # v in / prob_v out (dbl buf)
    if not use_device_prng:
        tile_bytes += 2 * (TB * Hp * 2)                              # bf16 uniforms stream
    work_bytes = 4 * (TB * max(Hp, Vp) * 4)                          # f32 temporaries slack
    vmem_bytes = w_bytes + bias_bytes + tile_bytes + work_bytes + (2 << 20)
    vmem_limit = int(min(_vmem_budget_bytes(), max(16 << 20, vmem_bytes)))

    compiler_params = pltpu.CompilerParams(
        dimension_semantics=("parallel",),
        vmem_limit_bytes=vmem_limit,
    )
    out_shape = jax.ShapeDtypeStruct((Bp, Vp), out_dtype)

    if use_device_prng:
        seed_arr = jnp.reshape(seed, (1,)).astype(jnp.int32)
        grid_spec = pltpu.PrefetchScalarGridSpec(
            num_scalar_prefetch=1,
            grid=grid,
            in_specs=[
                pl.BlockSpec((TB, Vp), lambda b, s: (b, 0)),   # v tile
                _res((Vp, Hp), lambda b, s: (0, 0)),           # W^T (resident)
                _res((Hp, Vp), lambda b, s: (0, 0)),           # W   (resident)
                _res((1, Hp), lambda b, s: (0, 0)),            # h_bias
                _res((1, Vp), lambda b, s: (0, 0)),            # v_bias
            ],
            out_specs=pl.BlockSpec((TB, Vp), lambda b, s: (b, 0)),
        )
        out_p = pl.pallas_call(
            _rbm_kernel_prng, out_shape=out_shape, grid_spec=grid_spec,
            compiler_params=compiler_params,
        )(seed_arr, v_p, wt_p, w_p, hb_p, vb_p)
    else:
        # Host-uniform fallback: bf16 uniforms (half the old f32 traffic).
        key = jax.random.PRNGKey(jnp.asarray(seed, jnp.int32))
        u = jax.random.uniform(key, (Bp, Hp), dtype=jnp.bfloat16)
        out_p = pl.pallas_call(
            _rbm_kernel_hostu, out_shape=out_shape, grid=grid,
            in_specs=[
                pl.BlockSpec((TB, Vp), lambda b: (b, 0)),      # v tile
                pl.BlockSpec((TB, Hp), lambda b: (b, 0)),      # uniforms tile
                _res((Vp, Hp), lambda b: (0, 0)),              # W^T (resident)
                _res((Hp, Vp), lambda b: (0, 0)),              # W   (resident)
                _res((1, Hp), lambda b: (0, 0)),               # h_bias
                _res((1, Vp), lambda b: (0, 0)),               # v_bias
            ],
            out_specs=pl.BlockSpec((TB, Vp), lambda b: (b, 0)),
            compiler_params=compiler_params,
        )(v_p, u, wt_p, w_p, hb_p, vb_p)

    return out_p[:B, :V]


if __name__ == "__main__":
    # Small deterministic problem consistent with RBM.__init__:
    #   n_visible_features=118, n_classes=10 -> n_visible_total=128, n_hidden=128
    n_visible_features = 118
    n_classes = 10
    n_visible_total = n_visible_features + n_classes
    n_hidden = 128
    batch = 32

    key = jax.random.PRNGKey(0)
    k_w, k_feat, k_lab = jax.random.split(key, 3)

    # Parameters (mirroring torch.randn(...)*0.1 init and zero biases)
    W = jax.random.normal(k_w, (n_hidden, n_visible_total), dtype=jnp.float32) * 0.1
    h_bias = jnp.zeros((n_hidden,), dtype=jnp.float32)
    v_bias = jnp.zeros((n_visible_total,), dtype=jnp.float32)

    # Inputs: binary features + one-hot labels (prepare_input_data glue)
    features = (
        jax.random.uniform(k_feat, (batch, n_visible_features)) < 0.5
    ).astype(jnp.float32)
    labels = jax.random.randint(k_lab, (batch,), 0, n_classes)
    one_hot = jax.nn.one_hot(labels, n_classes, dtype=jnp.float32)
    v = jnp.concatenate([features, one_hot], axis=1)   # [batch, n_visible_total]

    # Preferred configuration first; graceful degradation if a lowering feature
    # (single-buffer pipeline_mode / hardware PRNG) is unavailable in this runtime.
    configs = (
        dict(use_device_prng=True, single_buffer_invariants=True),
        dict(use_device_prng=True, single_buffer_invariants=False),
        dict(use_device_prng=False, single_buffer_invariants=False),
    )
    prob_v, used, last_err = None, None, None
    for cfg in configs:
        try:
            prob_v = jax.block_until_ready(
                rbm_forward(v, W, h_bias, v_bias, jnp.int32(0), **cfg))
            used = cfg
            break
        except Exception as e:   # pragma: no cover - safety net only
            last_err = e
    if prob_v is None:
        raise last_err

    # Basic semantic checks (probabilities, right shape, non-degenerate).
    assert prob_v.shape == (batch, n_visible_total)
    assert bool(jnp.all(jnp.isfinite(prob_v)))
    assert bool(jnp.all((prob_v >= 0.0) & (prob_v <= 1.0)))
    assert float(jnp.std(prob_v)) > 0.0

    # Determinism (same seed) and stochasticity (different seed) of the Gibbs step.
    def run(seed_val):
        return jax.block_until_ready(
            rbm_forward(v, W, h_bias, v_bias, jnp.int32(seed_val), **used))

    prob_v_same = run(0)
    prob_v_diff = run(1)
    assert bool(jnp.all(prob_v == prob_v_same))
    assert bool(jnp.any(prob_v != prob_v_diff))

    print("KERNEL_OK")
</pallas_src>

<mosaic_0001>
module attributes {stable_mosaic.version = 11 : i64} {
  func.func @_rbm_kernel_prng(%arg0: i32, %arg1: memref<1xi32, #tpu.memory_space<smem>>, %arg2: memref<32x128xbf16, #tpu.memory_space<vmem>>, %arg3: memref<128x128xbf16, #tpu.memory_space<vmem>>, %arg4: memref<128x128xbf16, #tpu.memory_space<vmem>>, %arg5: memref<1x128xf32, #tpu.memory_space<vmem>>, %arg6: memref<1x128xf32, #tpu.memory_space<vmem>>, %arg7: memref<32x128xf32, #tpu.memory_space<vmem>>) attributes {dimension_semantics = [#tpu.dimension_semantics<parallel>], iteration_bounds = array<i64: 1>, scalar_prefetch = 1 : i64, scratch_operands = 0 : i64, tpu.core_type = #tpu.core_type<tc>, window_params = [{transform_indices = @transform_0, window_bounds = array<i64: 32, 128>}, {pipeline_mode = #tpu.pipeline_mode<synchronous>, transform_indices = @transform_1, window_bounds = array<i64: 128, 128>}, {pipeline_mode = #tpu.pipeline_mode<synchronous>, transform_indices = @transform_2, window_bounds = array<i64: 128, 128>}, {pipeline_mode = #tpu.pipeline_mode<synchronous>, transform_indices = @transform_3, window_bounds = array<i64: 1, 128>}, {pipeline_mode = #tpu.pipeline_mode<synchronous>, transform_indices = @transform_4, window_bounds = array<i64: 1, 128>}, {transform_indices = @transform_5, window_bounds = array<i64: 32, 128>}]} {
    %c0 = arith.constant 0 : index
    %0 = memref.load %arg1[%c0] : memref<1xi32, #tpu.memory_space<smem>>
    %1 = arith.addi %0, %arg0 : i32
    "tpu.prng_set_seed_32"(%1) : (i32) -> ()
    %2 = "tpu.prng_random_bits"() : () -> vector<32x128xi32>
    %c8388607_i32 = arith.constant 8388607 : i32
    %3 = vector.broadcast %c8388607_i32 : i32 to vector<32x128xi32>
    %4 = arith.andi %2, %3 : vector<32x128xi32>
    %5 = arith.sitofp %4 : vector<32x128xi32> to vector<32x128xf32>
    %cst = arith.constant 1.1920929E-7 : f32
    %6 = vector.broadcast %cst : f32 to vector<32x128xf32>
    %7 = arith.mulf %5, %6 : vector<32x128xf32>
    %c0_0 = arith.constant 0 : index
    %c0_1 = arith.constant 0 : index
    %8 = vector.load %arg2[%c0_0, %c0_1] : memref<32x128xbf16, #tpu.memory_space<vmem>>, vector<32x128xbf16>
    %c0_2 = arith.constant 0 : index
    %c0_3 = arith.constant 0 : index
    %9 = vector.load %arg3[%c0_2, %c0_3] : memref<128x128xbf16, #tpu.memory_space<vmem>>, vector<128x128xbf16>
    %c0_4 = arith.constant 0 : index
    %c0_5 = arith.constant 0 : index
    %10 = vector.load %arg4[%c0_4, %c0_5] : memref<128x128xbf16, #tpu.memory_space<vmem>>, vector<128x128xbf16>
    %c0_6 = arith.constant 0 : index
    %c0_7 = arith.constant 0 : index
    %11 = vector.load %arg5[%c0_6, %c0_7] : memref<1x128xf32, #tpu.memory_space<vmem>>, vector<1x128xf32>
    %c0_8 = arith.constant 0 : index
    %c0_9 = arith.constant 0 : index
    %12 = vector.load %arg6[%c0_8, %c0_9] : memref<1x128xf32, #tpu.memory_space<vmem>>, vector<1x128xf32>
    %cst_10 = arith.constant dense<0.000000e+00> : vector<32x128xf32>
    %13 = tpu.matmul %8, %9, %cst_10 {dimension_numbers = #tpu.dot_dimension_numbers<[1], [0], [0], [1], [0, 0, 1, 1], [], []>} : vector<32x128xbf16>, vector<128x128xbf16>, vector<32x128xf32> -> vector<32x128xf32>
    %14 = vector.broadcast %11 : vector<1x128xf32> to vector<32x128xf32>
    %15 = arith.addf %13, %14 : vector<32x128xf32>
    %16 = arith.negf %15 : vector<32x128xf32>
    %17 = math.exp %16 : vector<32x128xf32>
    %cst_11 = arith.constant 1.000000e+00 : f32
    %18 = vector.broadcast %cst_11 : f32 to vector<32x128xf32>
    %19 = arith.addf %18, %17 : vector<32x128xf32>
    %20 = arith.divf %18, %19 : vector<32x128xf32>
    %21 = arith.cmpf olt, %7, %20 : vector<32x128xf32>
    %22 = arith.extui %21 : vector<32x128xi1> to vector<32x128xi32>
    %23 = arith.sitofp %22 : vector<32x128xi32> to vector<32x128xf32>
    %24 = arith.truncf %23 : vector<32x128xf32> to vector<32x128xbf16>
    %cst_12 = arith.constant dense<0.000000e+00> : vector<32x128xf32>
    %25 = tpu.matmul %24, %10, %cst_12 {dimension_numbers = #tpu.dot_dimension_numbers<[1], [0], [0], [1], [0, 0, 1, 1], [], []>} : vector<32x128xbf16>, vector<128x128xbf16>, vector<32x128xf32> -> vector<32x128xf32>
    %26 = vector.broadcast %12 : vector<1x128xf32> to vector<32x128xf32>
    %27 = arith.addf %25, %26 : vector<32x128xf32>
    %28 = arith.negf %27 : vector<32x128xf32>
    %29 = math.exp %28 : vector<32x128xf32>
    %cst_13 = arith.constant 1.000000e+00 : f32
    %30 = vector.broadcast %cst_13 : f32 to vector<32x128xf32>
    %31 = arith.addf %30, %29 : vector<32x128xf32>
    %32 = arith.divf %30, %31 : vector<32x128xf32>
    %c0_14 = arith.constant 0 : index
    %c0_15 = arith.constant 0 : index
    %33 = vector.load %arg7[%c0_14, %c0_15] : memref<32x128xf32, #tpu.memory_space<vmem>>, vector<32x128xf32>
    tpu.vector_store %arg7[%c0_14, %c0_15], %32 {strides = array<i32>} : memref<32x128xf32, #tpu.memory_space<vmem>>, vector<32x128xf32>,
    return
  }
  func.func @transform_0(%arg0: i32, %arg1: memref<1xi32, #tpu.memory_space<smem>>) -> (i32, i32) {
    %c0_i32 = arith.constant 0 : i32
    %c0_i32_0 = arith.constant 0 : i32
    return %arg0, %c0_i32 : i32, i32
  }
  func.func @transform_1(%arg0: i32, %arg1: memref<1xi32, #tpu.memory_space<smem>>) -> (i32, i32) {
    %c0_i32 = arith.constant 0 : i32
    %c0_i32_0 = arith.constant 0 : i32
    %c0_i32_1 = arith.constant 0 : i32
    return %c0_i32, %c0_i32_0 : i32, i32
  }
  func.func @transform_2(%arg0: i32, %arg1: memref<1xi32, #tpu.memory_space<smem>>) -> (i32, i32) {
    %c0_i32 = arith.constant 0 : i32
    %c0_i32_0 = arith.constant 0 : i32
    %c0_i32_1 = arith.constant 0 : i32
    return %c0_i32, %c0_i32_0 : i32, i32
  }
  func.func @transform_3(%arg0: i32, %arg1: memref<1xi32, #tpu.memory_space<smem>>) -> (i32, i32) {
    %c0_i32 = arith.constant 0 : i32
    %c0_i32_0 = arith.constant 0 : i32
    %c0_i32_1 = arith.constant 0 : i32
    return %c0_i32, %c0_i32_0 : i32, i32
  }
  func.func @transform_4(%arg0: i32, %arg1: memref<1xi32, #tpu.memory_space<smem>>) -> (i32, i32) {
    %c0_i32 = arith.constant 0 : i32
    %c0_i32_0 = arith.constant 0 : i32
    %c0_i32_1 = arith.constant 0 : i32
    return %c0_i32, %c0_i32_0 : i32, i32
  }
  func.func @transform_5(%arg0: i32, %arg1: memref<1xi32, #tpu.memory_space<smem>>) -> (i32, i32) {
    %c0_i32 = arith.constant 0 : i32
    %c0_i32_0 = arith.constant 0 : i32
    return %arg0, %c0_i32 : i32, i32
  }
}

module attributes {stable_mosaic.version = 11 : i64} {
  func.func @_rbm_kernel_prng(%arg0: i32, %arg1: memref<1xi32, #tpu.memory_space<smem>>, %arg2: memref<32x128xbf16, #tpu.memory_space<vmem>>, %arg3: memref<128x128xbf16, #tpu.memory_space<vmem>>, %arg4: memref<128x128xbf16, #tpu.memory_space<vmem>>, %arg5: memref<1x128xf32, #tpu.memory_space<vmem>>, %arg6: memref<1x128xf32, #tpu.memory_space<vmem>>, %arg7: memref<32x128xf32, #tpu.memory_space<vmem>>) attributes {dimension_semantics = [#tpu.dimension_semantics<parallel>], iteration_bounds = array<i64: 1>, scalar_prefetch = 1 : i64, scratch_operands = 0 : i64, tpu.core_type = #tpu.core_type<tc>, window_params = [{transform_indices = @transform_0, window_bounds = array<i64: 32, 128>}, {pipeline_mode = #tpu.pipeline_mode<synchronous>, transform_indices = @transform_1, window_bounds = array<i64: 128, 128>}, {pipeline_mode = #tpu.pipeline_mode<synchronous>, transform_indices = @transform_2, window_bounds = array<i64: 128, 128>}, {pipeline_mode = #tpu.pipeline_mode<synchronous>, transform_indices = @transform_3, window_bounds = array<i64: 1, 128>}, {pipeline_mode = #tpu.pipeline_mode<synchronous>, transform_indices = @transform_4, window_bounds = array<i64: 1, 128>}, {transform_indices = @transform_5, window_bounds = array<i64: 32, 128>}]} {
    %c0 = arith.constant 0 : index
    %0 = memref.load %arg1[%c0] : memref<1xi32, #tpu.memory_space<smem>>
    %1 = arith.addi %0, %arg0 : i32
    "tpu.prng_set_seed_32"(%1) : (i32) -> ()
    %2 = "tpu.prng_random_bits"() : () -> vector<32x128xi32>
    %c8388607_i32 = arith.constant 8388607 : i32
    %3 = vector.broadcast %c8388607_i32 : i32 to vector<32x128xi32>
    %4 = arith.andi %2, %3 : vector<32x128xi32>
    %5 = arith.sitofp %4 : vector<32x128xi32> to vector<32x128xf32>
    %cst = arith.constant 1.1920929E-7 : f32
    %6 = vector.broadcast %cst : f32 to vector<32x128xf32>
    %7 = arith.mulf %5, %6 : vector<32x128xf32>
    %c0_0 = arith.constant 0 : index
    %c0_1 = arith.constant 0 : index
    %8 = vector.load %arg2[%c0_0, %c0_1] : memref<32x128xbf16, #tpu.memory_space<vmem>>, vector<32x128xbf16>
    %c0_2 = arith.constant 0 : index
    %c0_3 = arith.constant 0 : index
    %9 = vector.load %arg3[%c0_2, %c0_3] : memref<128x128xbf16, #tpu.memory_space<vmem>>, vector<128x128xbf16>
    %c0_4 = arith.constant 0 : index
    %c0_5 = arith.constant 0 : index
    %10 = vector.load %arg4[%c0_4, %c0_5] : memref<128x128xbf16, #tpu.memory_space<vmem>>, vector<128x128xbf16>
    %c0_6 = arith.constant 0 : index
    %c0_7 = arith.constant 0 : index
    %11 = vector.load %arg5[%c0_6, %c0_7] : memref<1x128xf32, #tpu.memory_space<vmem>>, vector<1x128xf32>
    %c0_8 = arith.constant 0 : index
    %c0_9 = arith.constant 0 : index
    %12 = vector.load %arg6[%c0_8, %c0_9] : memref<1x128xf32, #tpu.memory_space<vmem>>, vector<1x128xf32>
    %cst_10 = arith.constant dense<0.000000e+00> : vector<32x128xf32>
    %13 = tpu.matmul %8, %9, %cst_10 {dimension_numbers = #tpu.dot_dimension_numbers<[1], [0], [0], [1], [0, 0, 1, 1], [], []>} : vector<32x128xbf16>, vector<128x128xbf16>, vector<32x128xf32> -> vector<32x128xf32>
    %14 = vector.broadcast %11 : vector<1x128xf32> to vector<32x128xf32>
    %15 = arith.addf %13, %14 : vector<32x128xf32>
    %16 = arith.negf %15 : vector<32x128xf32>
    %17 = math.exp %16 : vector<32x128xf32>
    %cst_11 = arith.constant 1.000000e+00 : f32
    %18 = vector.broadcast %cst_11 : f32 to vector<32x128xf32>
    %19 = arith.addf %18, %17 : vector<32x128xf32>
    %20 = arith.divf %18, %19 : vector<32x128xf32>
    %21 = arith.cmpf olt, %7, %20 : vector<32x128xf32>
    %22 = arith.extui %21 : vector<32x128xi1> to vector<32x128xi32>
    %23 = arith.sitofp %22 : vector<32x128xi32> to vector<32x128xf32>
    %24 = arith.truncf %23 : vector<32x128xf32> to vector<32x128xbf16>
    %cst_12 = arith.constant dense<0.000000e+00> : vector<32x128xf32>
    %25 = tpu.matmul %24, %10, %cst_12 {dimension_numbers = #tpu.dot_dimension_numbers<[1], [0], [0], [1], [0, 0, 1, 1], [], []>} : vector<32x128xbf16>, vector<128x128xbf16>, vector<32x128xf32> -> vector<32x128xf32>
    %26 = vector.broadcast %12 : vector<1x128xf32> to vector<32x128xf32>
    %27 = arith.addf %25, %26 : vector<32x128xf32>
    %28 = arith.negf %27 : vector<32x128xf32>
    %29 = math.exp %28 : vector<32x128xf32>
    %cst_13 = arith.constant 1.000000e+00 : f32
    %30 = vector.broadcast %cst_13 : f32 to vector<32x128xf32>
    %31 = arith.addf %30, %29 : vector<32x128xf32>
    %32 = arith.divf %30, %31 : vector<32x128xf32>
    %c0_14 = arith.constant 0 : index
    %c0_15 = arith.constant 0 : index
    %33 = vector.load %arg7[%c0_14, %c0_15] : memref<32x128xf32, #tpu.memory_space<vmem>>, vector<32x128xf32>
    tpu.vector_store %arg7[%c0_14, %c0_15], %32 {strides = array<i32>} : memref<32x128xf32, #tpu.memory_space<vmem>>, vector<32x128xf32>,
    return
  }
  func.func @transform_0(%arg0: i32, %arg1: memref<1xi32, #tpu.memory_space<smem>>) -> (i32, i32) {
    %c0_i32 = arith.constant 0 : i32
    %c0_i32_0 = arith.constant 0 : i32
    return %arg0, %c0_i32 : i32, i32
  }
  func.func @transform_1(%arg0: i32, %arg1: memref<1xi32, #tpu.memory_space<smem>>) -> (i32, i32) {
    %c0_i32 = arith.constant 0 : i32
    %c0_i32_0 = arith.constant 0 : i32
    %c0_i32_1 = arith.constant 0 : i32
    return %c0_i32, %c0_i32_0 : i32, i32
  }
  func.func @transform_2(%arg0: i32, %arg1: memref<1xi32, #tpu.memory_space<smem>>) -> (i32, i32) {
    %c0_i32 = arith.constant 0 : i32
    %c0_i32_0 = arith.constant 0 : i32
    %c0_i32_1 = arith.constant 0 : i32
    return %c0_i32, %c0_i32_0 : i32, i32
  }
  func.func @transform_3(%arg0: i32, %arg1: memref<1xi32, #tpu.memory_space<smem>>) -> (i32, i32) {
    %c0_i32 = arith.constant 0 : i32
    %c0_i32_0 = arith.constant 0 : i32
    %c0_i32_1 = arith.constant 0 : i32
    return %c0_i32, %c0_i32_0 : i32, i32
  }
  func.func @transform_4(%arg0: i32, %arg1: memref<1xi32, #tpu.memory_space<smem>>) -> (i32, i32) {
    %c0_i32 = arith.constant 0 : i32
    %c0_i32_0 = arith.constant 0 : i32
    %c0_i32_1 = arith.constant 0 : i32
    return %c0_i32, %c0_i32_0 : i32, i32
  }
  func.func @transform_5(%arg0: i32, %arg1: memref<1xi32, #tpu.memory_space<smem>>) -> (i32, i32) {
    %c0_i32 = arith.constant 0 : i32
    %c0_i32_0 = arith.constant 0 : i32
    return %arg0, %c0_i32 : i32, i32
  }
}

module attributes {stable_mosaic.version = 11 : i64} {
  func.func @_rbm_kernel_hostu(%arg0: i32, %arg1: memref<32x128xbf16, #tpu.memory_space<vmem>>, %arg2: memref<32x128xbf16, #tpu.memory_space<vmem>>, %arg3: memref<128x128xbf16, #tpu.memory_space<vmem>>, %arg4: memref<128x128xbf16, #tpu.memory_space<vmem>>, %arg5: memref<1x128xf32, #tpu.memory_space<vmem>>, %arg6: memref<1x128xf32, #tpu.memory_space<vmem>>, %arg7: memref<32x128xf32, #tpu.memory_space<vmem>>) attributes {dimension_semantics = [#tpu.dimension_semantics<parallel>], iteration_bounds = array<i64: 1>, scalar_prefetch = 0 : i64, scratch_operands = 0 : i64, tpu.core_type = #tpu.core_type<tc>, window_params = [{transform_indices = @transform_0, window_bounds = array<i64: 32, 128>}, {transform_indices = @transform_1, window_bounds = array<i64: 32, 128>}, {pipeline_mode = #tpu.pipeline_mode<synchronous>, transform_indices = @transform_2, window_bounds = array<i64: 128, 128>}, {pipeline_mode = #tpu.pipeline_mode<synchronous>, transform_indices = @transform_3, window_bounds = array<i64: 128, 128>}, {pipeline_mode = #tpu.pipeline_mode<synchronous>, transform_indices = @transform_4, window_bounds = array<i64: 1, 128>}, {pipeline_mode = #tpu.pipeline_mode<synchronous>, transform_indices = @transform_5, window_bounds = array<i64: 1, 128>}, {transform_indices = @transform_6, window_bounds = array<i64: 32, 128>}]} {
    %c0 = arith.constant 0 : index
    %c0_0 = arith.constant 0 : index
    %0 = vector.load %arg2[%c0, %c0_0] : memref<32x128xbf16, #tpu.memory_space<vmem>>, vector<32x128xbf16>
    %1 = arith.extf %0 : vector<32x128xbf16> to vector<32x128xf32>
    %c0_1 = arith.constant 0 : index
    %c0_2 = arith.constant 0 : index
    %2 = vector.load %arg1[%c0_1, %c0_2] : memref<32x128xbf16, #tpu.memory_space<vmem>>, vector<32x128xbf16>
    %c0_3 = arith.constant 0 : index
    %c0_4 = arith.constant 0 : index
    %3 = vector.load %arg3[%c0_3, %c0_4] : memref<128x128xbf16, #tpu.memory_space<vmem>>, vector<128x128xbf16>
    %c0_5 = arith.constant 0 : index
    %c0_6 = arith.constant 0 : index
    %4 = vector.load %arg4[%c0_5, %c0_6] : memref<128x128xbf16, #tpu.memory_space<vmem>>, vector<128x128xbf16>
    %c0_7 = arith.constant 0 : index
    %c0_8 = arith.constant 0 : index
    %5 = vector.load %arg5[%c0_7, %c0_8] : memref<1x128xf32, #tpu.memory_space<vmem>>, vector<1x128xf32>
    %c0_9 = arith.constant 0 : index
    %c0_10 = arith.constant 0 : index
    %6 = vector.load %arg6[%c0_9, %c0_10] : memref<1x128xf32, #tpu.memory_space<vmem>>, vector<1x128xf32>
    %cst = arith.constant dense<0.000000e+00> : vector<32x128xf32>
    %7 = tpu.matmul %2, %3, %cst {dimension_numbers = #tpu.dot_dimension_numbers<[1], [0], [0], [1], [0, 0, 1, 1], [], []>} : vector<32x128xbf16>, vector<128x128xbf16>, vector<32x128xf32> -> vector<32x128xf32>
    %8 = vector.broadcast %5 : vector<1x128xf32> to vector<32x128xf32>
    %9 = arith.addf %7, %8 : vector<32x128xf32>
    %10 = arith.negf %9 : vector<32x128xf32>
    %11 = math.exp %10 : vector<32x128xf32>
    %cst_11 = arith.constant 1.000000e+00 : f32
    %12 = vector.broadcast %cst_11 : f32 to vector<32x128xf32>
    %13 = arith.addf %12, %11 : vector<32x128xf32>
    %14 = arith.divf %12, %13 : vector<32x128xf32>
    %15 = arith.cmpf olt, %1, %14 : vector<32x128xf32>
    %16 = arith.extui %15 : vector<32x128xi1> to vector<32x128xi32>
    %17 = arith.sitofp %16 : vector<32x128xi32> to vector<32x128xf32>
    %18 = arith.truncf %17 : vector<32x128xf32> to vector<32x128xbf16>
    %cst_12 = arith.constant dense<0.000000e+00> : vector<32x128xf32>
    %19 = tpu.matmul %18, %4, %cst_12 {dimension_numbers = #tpu.dot_dimension_numbers<[1], [0], [0], [1], [0, 0, 1, 1], [], []>} : vector<32x128xbf16>, vector<128x128xbf16>, vector<32x128xf32> -> vector<32x128xf32>
    %20 = vector.broadcast %6 : vector<1x128xf32> to vector<32x128xf32>
    %21 = arith.addf %19, %20 : vector<32x128xf32>
    %22 = arith.negf %21 : vector<32x128xf32>
    %23 = math.exp %22 : vector<32x128xf32>
    %cst_13 = arith.constant 1.000000e+00 : f32
    %24 = vector.broadcast %cst_13 : f32 to vector<32x128xf32>
    %25 = arith.addf %24, %23 : vector<32x128xf32>
    %26 = arith.divf %24, %25 : vector<32x128xf32>
    %c0_14 = arith.constant 0 : index
    %c0_15 = arith.constant 0 : index
    %27 = vector.load %arg7[%c0_14, %c0_15] : memref<32x128xf32, #tpu.memory_space<vmem>>, vector<32x128xf32>
    tpu.vector_store %arg7[%c0_14, %c0_15], %26 {strides = array<i32>} : memref<32x128xf32, #tpu.memory_space<vmem>>, vector<32x128xf32>,
    return
  }
  func.func @transform_0(%arg0: i32) -> (i32, i32) {
    %c0_i32 = arith.constant 0 : i32
    %c0_i32_0 = arith.constant 0 : i32
    return %arg0, %c0_i32 : i32, i32
  }
  func.func @transform_1(%arg0: i32) -> (i32, i32) {
    %c0_i32 = arith.constant 0 : i32
    %c0_i32_0 = arith.constant 0 : i32
    return %arg0, %c0_i32 : i32, i32
  }
  func.func @transform_2(%arg0: i32) -> (i32, i32) {
    %c0_i32 = arith.constant 0 : i32
    %c0_i32_0 = arith.constant 0 : i32
    %c0_i32_1 = arith.constant 0 : i32
    return %c0_i32, %c0_i32_0 : i32, i32
  }
  func.func @transform_3(%arg0: i32) -> (i32, i32) {
    %c0_i32 = arith.constant 0 : i32
    %c0_i32_0 = arith.constant 0 : i32
    %c0_i32_1 = arith.constant 0 : i32
    return %c0_i32, %c0_i32_0 : i32, i32
  }
  func.func @transform_4(%arg0: i32) -> (i32, i32) {
    %c0_i32 = arith.constant 0 : i32
    %c0_i32_0 = arith.constant 0 : i32
    %c0_i32_1 = arith.constant 0 : i32
    return %c0_i32, %c0_i32_0 : i32, i32
  }
  func.func @transform_5(%arg0: i32) -> (i32, i32) {
    %c0_i32 = arith.constant 0 : i32
    %c0_i32_0 = arith.constant 0 : i32
    %c0_i32_1 = arith.constant 0 : i32
    return %c0_i32, %c0_i32_0 : i32, i32
  }
  func.func @transform_6(%arg0: i32) -> (i32, i32) {
    %c0_i32 = arith.constant 0 : i32
    %c0_i32_0 = arith.constant 0 : i32
    return %arg0, %c0_i32 : i32, i32
  }
}

</mosaic_0001>

<bundles_post_ra>
// kernel: rbm_forward.1
= control target key start
LH: loop header
LB: loop body
LE: loop exit
PB: predicated region body
PF: predicated region fallthrough
CT: control target
= control target key end

     0   :  { %v26_v1 = vlaneseq  ;;  %s807_s0 = inlined_call_operand.<no memory space> [shape: s32[1], index: 0, kind: input, shape index: {}]   ;;  %s808_s1 = inlined_call_operand.vmem [shape: bf16[32,128], index: 1, kind: input, shape index: {}]   ;;  %s809_s2 = inlined_call_operand.vmem [shape: bf16[128,128], index: 2, kind: input, shape index: {}]   ;;  %s810_s3 = inlined_call_operand.vmem [shape: bf16[128,128], index: 3, kind: input, shape index: {}]   ;;  %s811_s4 = inlined_call_operand.vmem [shape: f32[1,128], index: 4, kind: input, shape index: {}]   ;;  %s812_s5 = inlined_call_operand.vmem [shape: f32[1,128], index: 5, kind: input, shape index: {}]   ;;  %s813_s6 = inlined_call_operand.hbm [shape: f32[32,128], index: 6, kind: output, shape index: {}]  }
   0x1   :  { %v602_v0 = vld [vmem:[%s809_s2] sm:$0xff]   ;;  %v721_v2 = vstv %s807_s0  ;;  %v603_v3 = vld [vmem:[%s809_s2 + $0x8] sm:$0xff]   ;;  %v604_v5 = vld [vmem:[%s809_s2 + $0x10] sm:$0xff]  }
   0x2   :  { %558 = vmatprep.subr.bf16.mxu0 %v602_v0  ;;  %v30_v4 = vadd.s32 %v721_v2, %v26_v1  ;;  %v605_v9 = vld [vmem:[%s809_s2 + $0x18] sm:$0xff]   ;;  %v610_v11 = vld [vmem:[%s808_s1] sm:$0xff]  }
   0x3   :  { %559 = vmatpush3.bf16.msra.mxu0 %v602_v0  ;;  %v606_v13 = vld [vmem:[%s809_s2 + $0x20] sm:$0xff]   ;;  %574 = vmatprep.mubr.bf16.mxu0 %v610_v11 }
   0x4   :  { %560 = vmatprep.subr.bf16.mxu0 %v603_v3  ;;  %v32_v6 = vshll.u32 %v30_v4, 13  ;;  %v31_v7 = vadd.s32 %v30_v4, %v30_v4  ;;  %v33_v8 = vshrl.u32 %v30_v4, 19 }
   0x6   :  { %v34_v10 = vor.u32 %v33_v8, %v32_v6 }
   0x7   :  { %561 = vmatpush3.bf16.msra.mxu0 %v603_v3 }
   0x8   :  { %562 = vmatprep.subr.bf16.mxu0 %v604_v5  ;;  %v35_v12 = vxor.u32 %v34_v10, %v31_v7 }
   0xa   :  { %v36_v14 = vadd.s32 %v35_v12, %v31_v7  ;;  %v37_v15 = vshll.u32 %v35_v12, 15  ;;  %v38_v16 = vshrl.u32 %v35_v12, 17 }
   0xb   :  { %563 = vmatpush3.bf16.msra.mxu0 %v604_v5 }
   0xc   :  { %564 = vmatprep.subr.bf16.mxu0 %v605_v9  ;;  %v39_v17 = vor.u32 %v38_v16, %v37_v15 }
   0xf   :  { %565 = vmatpush3.bf16.msra.mxu0 %v605_v9 }
  0x10   :  { %12 = vsyncpa [#allocation5], 0  ;;  %566 = vmatprep.subr.bf16.mxu0 %v606_v13  ;;  %v607_v18 = vld [vmem:[%s809_s2 + $0x28] sm:$0xff]   ;;  %v40_v19 = vxor.u32 %v39_v17, %v36_v14  ;;  %v608_v23 = vld [vmem:[%s809_s2 + $0x30] sm:$0xff]   ;;  %v28_v25 = vxor.u32 %v721_v2, %v721_v2 }
  0x11   :  { %v609_v27 = vld [vmem:[%s809_s2 + $0x38] sm:$0xff]   ;;  %v611_v34 = vld [vmem:[%s808_s1 + $0x8] sm:$0xff]  }
  0x12   :  { %v41_v20 = vadd.s32 %v40_v19, %v36_v14  ;;  %v42_v21 = vshll.u32 %v40_v19, 26  ;;  %v43_v22 = vshrl.u32 %v40_v19, 6  ;;  %v750_v31 = vxor.u32 466688986, %v28_v25 }
  0x13   :  { %567 = vmatpush3.bf16.msra.mxu0 %v606_v13 }
  0x14   :  { %568 = vmatprep.subr.bf16.mxu0 %v607_v18  ;;  %v44_v24 = vor.u32 %v43_v22, %v42_v21 }
  0x16   :  { %v45_v26 = vxor.u32 %v44_v24, %v41_v20 }
  0x17   :  { %569 = vmatpush3.bf16.msra.mxu0 %v607_v18 }
  0x18   :  { %570 = vmatprep.subr.bf16.mxu0 %v608_v23  ;;  %v46_v28 = vadd.s32 %v45_v26, %v41_v20  ;;  %v47_v29 = vshll.u32 %v45_v26, 6  ;;  %v48_v30 = vshrl.u32 %v45_v26, 26 }
  0x1a   :  { %v49_v32 = vor.u32 %v48_v30, %v47_v29  ;;  %v51_v35 = vadd.s32 %v46_v28, %v721_v2 }
  0x1b   :  { %571 = vmatpush3.bf16.msra.mxu0 %v608_v23 }
  0x1c   :  { %572 = vmatprep.subr.bf16.mxu0 %v609_v27  ;;  %v50_v33 = vxor.u32 %v49_v32, %v46_v28 }
  0x1e   :  { %v52_v36 = vadd.s32 %v50_v33, %v750_v31 }
  0x1f   :  { %573 = vmatpush3.bf16.msra.mxu0 %v609_v27 }
  0x20   :  { %v53_v37 = vadd.s32 1, %v52_v36 }
  0x22   :  { %575 = vmatmul.mubr.bf16.vlgmr.msra.gmra.mrb[0].mxu0 %v611_v34  ;;  %v54_v38 = vadd.s32 %v53_v37, %v51_v35  ;;  %v55_v39 = vshll.u32 %v53_v37, 17  ;;  %v56_v40 = vshrl.u32 %v53_v37, 15 }
  0x24   :  { %v57_v41 = vor.u32 %v56_v40, %v55_v39 }
  0x26   :  { %v58_v42 = vxor.u32 %v57_v41, %v54_v38 }
  0x28   :  { %v59_v43 = vadd.s32 %v58_v42, %v54_v38  ;;  %v60_v44 = vshll.u32 %v58_v42, 29  ;;  %v61_v45 = vshrl.u32 %v58_v42, 3 }
  0x2a   :  { %v62_v46 = vor.u32 %v61_v45, %v60_v44  ;;  %v612_v45 = vld [vmem:[%s810_s3] sm:$0xff]  }
  0x2b   :  { %578 = vmatprep.subr.bf16.mxu1 %v612_v45 }
  0x2c   :  { %v63_v47 = vxor.u32 %v62_v46, %v59_v43  ;;  %579 = vmatpush3.bf16.msra.mxu1 %v612_v45 }
  0x2e   :  { %v64_v48 = vadd.s32 %v63_v47, %v59_v43  ;;  %v65_v49 = vshll.u32 %v63_v47, 16  ;;  %v66_v50 = vshrl.u32 %v63_v47, 16 }
  0x30   :  { %v67_v51 = vor.u32 %v66_v50, %v65_v49  ;;  %v613_v50 = vld [vmem:[%s810_s3 + $0x8] sm:$0xff]  }
  0x31   :  { %580 = vmatprep.subr.bf16.mxu1 %v613_v50 }
  0x32   :  { %v68_v52 = vxor.u32 %v67_v51, %v64_v48  ;;  %581 = vmatpush3.bf16.msra.mxu1 %v613_v50 }
  0x34   :  { %v69_v53 = vadd.s32 %v68_v52, %v64_v48  ;;  %v70_v54 = vshll.u32 %v68_v52, 24  ;;  %v71_v55 = vshrl.u32 %v68_v52, 8 }
  0x36   :  { %v72_v56 = vor.u32 %v71_v55, %v70_v54  ;;  %v74_v58 = vadd.s32 %v69_v53, %v750_v31  ;;  %v614_v55 = vld [vmem:[%s810_s3 + $0x10] sm:$0xff]  }
  0x37   :  { %582 = vmatprep.subr.bf16.mxu1 %v614_v55 }
  0x38   :  { %v73_v57 = vxor.u32 %v72_v56, %v69_v53  ;;  %583 = vmatpush3.bf16.msra.mxu1 %v614_v55  ;;  %v521_v55 = vld [vmem:[%s812_s5] ss:$0 sm:$0xff]  ;;  %s677_s5 = smov [#allocation4]  }
  0x39   :  { %s491_s9 = sshll.u32 %s677_s5, 4  ;;  %s492_s9 = int_to_ptr.vmem [resolvable:$true] %s491_s9 }
  0x3a   :  { %v75_v59 = vadd.s32 %v73_v57, %v721_v2  ;;  %s652_s10 = scalar_lea.vmem %s492_s9, 512  ;;  %p657_p1 = scmp.lt.s32.totalorder %s492_s9, %s492_s9 }
  0x3b   :  { %p653_p0 = scmp.ne.s32.totalorder %s492_s9, %s652_s10  ;;  %p658_p2 = scmp.lt.s32.totalorder %s652_s10, %s652_s10 }
  0x3c   :  { %v76_v60 = vadd.s32 2, %v75_v59 }
  0x3d   :  { %p659_p3 = por %p658_p2, %p657_p1 }
  0x3e   :  { %v77_v61 = vadd.s32 %v76_v60, %v74_v58  ;;  %v78_v62 = vshll.u32 %v76_v60, 13  ;;  %v79_v63 = vshrl.u32 %v76_v60, 19  ;;  %v615_v58 = vld [vmem:[%s810_s3 + $0x18] sm:$0xff]  }
  0x3f   :  { %584 = vmatprep.subr.bf16.mxu1 %v615_v58  ;;  %p660_p4 = pnand %p659_p3, %p653_p0 }
  0x40   :  { %v80_v0 = vor.u32 %v79_v63, %v78_v62  ;;  %585 = vmatpush3.bf16.msra.mxu1 %v615_v58  ;;  %v616_v63 = vld [vmem:[%s810_s3 + $0x20] sm:$0xff]  }
  0x41   :  { %586 = vmatprep.subr.bf16.mxu1 %v616_v63 }
  0x42   :  { %v81_v1 = vxor.u32 %v80_v0, %v77_v61 }
  0x44   :  { %v82_v3 = vadd.s32 %v81_v1, %v77_v61  ;;  %v83_v4 = vshll.u32 %v81_v1, 15  ;;  %v84_v5 = vshrl.u32 %v81_v1, 17  ;;  %587 = vmatpush3.bf16.msra.mxu1 %v616_v63 }
  0x46   :  { %v85_v6 = vor.u32 %v84_v5, %v83_v4  ;;  %v617_v5 = vld [vmem:[%s810_s3 + $0x28] sm:$0xff]  }
  0x47   :  { %588 = vmatprep.subr.bf16.mxu1 %v617_v5 }
  0x48   :  { %v86_v7 = vxor.u32 %v85_v6, %v82_v3  ;;  %589 = vmatpush3.bf16.msra.mxu1 %v617_v5 }
  0x4a   :  { %v87_v8 = vadd.s32 %v86_v7, %v82_v3  ;;  %v88_v9 = vshll.u32 %v86_v7, 26  ;;  %v89_v10 = vshrl.u32 %v86_v7, 6 }
  0x4c   :  { %v90_v11 = vor.u32 %v89_v10, %v88_v9 }
  0x4e   :  { %v91_v12 = vxor.u32 %v90_v11, %v87_v8 }
  0x50   :  { %v92_v13 = vadd.s32 %v91_v12, %v87_v8  ;;  %v93_v14 = vshll.u32 %v91_v12, 6  ;;  %v94_v15 = vshrl.u32 %v91_v12, 26  ;;  %v618_v8 = vld [vmem:[%s810_s3 + $0x30] sm:$0xff]   ;;  %v619_v12 = vld [vmem:[%s810_s3 + $0x38] sm:$0xff]  }
  0x51   :  { %590 = vmatprep.subr.bf16.mxu1 %v618_v8 }
  0x52   :  { %v95_v16 = vor.u32 %v94_v15, %v93_v14  ;;  %v97_v18 = vadd.s32 %v92_v13, %v721_v2  ;;  %591 = vmatpush3.bf16.msra.mxu1 %v618_v8  ;;  %v502_v14 = vld [vmem:[%s811_s4] ss:$0 sm:$0xff] }
  0x53   :  { %592 = vmatprep.subr.bf16.mxu1 %v619_v12 }
  0x54   :  { %v96_v17 = vxor.u32 %v95_v16, %v92_v13 }
  0x56   :  { %v98_v19 = vadd.s32 %v96_v17, %v721_v2  ;;  %593 = vmatpush3.bf16.msra.mxu1 %v619_v12 }
  0x58   :  { %v99_v20 = vadd.s32 3, %v98_v19 }
  0x5a   :  { %v100_v21 = vadd.s32 %v99_v20, %v97_v18  ;;  %v101_v22 = vshll.u32 %v99_v20, 17  ;;  %v102_v23 = vshrl.u32 %v99_v20, 15 }
  0x5c   :  { %v103_v24 = vor.u32 %v102_v23, %v101_v22 }
  0x5e   :  { %v104_v25 = vxor.u32 %v103_v24, %v100_v21 }
  0x60   :  { %v105_v26 = vadd.s32 %v104_v25, %v100_v21  ;;  %v106_v27 = vshll.u32 %v104_v25, 29  ;;  %v107_v28 = vshrl.u32 %v104_v25, 3 }
  0x62   :  { %v108_v29 = vor.u32 %v107_v28, %v106_v27 }
  0x64   :  { %v109_v30 = vxor.u32 %v108_v29, %v105_v26 }
  0x66   :  { %v110_v32 = vadd.s32 %v109_v30, %v105_v26  ;;  %v111_v33 = vshll.u32 %v109_v30, 16  ;;  %v112_v34 = vshrl.u32 %v109_v30, 16 }
  0x68   :  { %v113_v35 = vor.u32 %v112_v34, %v111_v33 }
  0x6a   :  { %v114_v36 = vxor.u32 %v113_v35, %v110_v32 }
  0x6c   :  { %v115_v37 = vadd.s32 %v114_v36, %v110_v32  ;;  %v116_v38 = vshll.u32 %v114_v36, 24  ;;  %v117_v39 = vshrl.u32 %v114_v36, 8 }
  0x6e   :  { %v118_v40 = vor.u32 %v117_v39, %v116_v38  ;;  %v120_v42 = vadd.s32 %v115_v37, %v721_v2 }
  0x70   :  { %v119_v41 = vxor.u32 %v118_v40, %v115_v37 }
  0x72   :  { %v121_v43 = vadd.s32 %v119_v41, %v750_v31 }
  0x74   :  { %v122_v44 = vadd.s32 4, %v121_v43 }
  0x76   :  { %v123_v46 = vadd.s32 %v122_v44, %v120_v42  ;;  %v124_v47 = vshll.u32 %v122_v44, 13  ;;  %v125_v48 = vshrl.u32 %v122_v44, 19 }
  0x78   :  { %v126_v49 = vor.u32 %v125_v48, %v124_v47 }
  0x7a   :  { %v127_v51 = vxor.u32 %v126_v49, %v123_v46 }
  0x7c   :  { %v128_v52 = vadd.s32 %v127_v51, %v123_v46  ;;  %v129_v53 = vshll.u32 %v127_v51, 15  ;;  %v130_v54 = vshrl.u32 %v127_v51, 17 }
  0x7e   :  { %v131_v56 = vor.u32 %v130_v54, %v129_v53  ;;  %v676_v54 = vmov 1.0|1.0  }
  0x80   :  { %v132_v57 = vxor.u32 %v131_v56, %v128_v52 }
  0x82   :  { %v133_v59 = vadd.s32 %v132_v57, %v128_v52  ;;  %v134_v60 = vshll.u32 %v132_v57, 26  ;;  %v135_v61 = vshrl.u32 %v132_v57, 6 }
  0x84   :  { %v136_v62 = vor.u32 %v135_v61, %v134_v60 }
  0x86   :  { %v137_v0 = vxor.u32 %v136_v62, %v133_v59 }
  0x88   :  { %v138_v1 = vadd.s32 %v137_v0, %v133_v59  ;;  %v139_v3 = vshll.u32 %v137_v0, 6  ;;  %v140_v4 = vshrl.u32 %v137_v0, 26 }
  0x8a   :  { %v141_v6 = vor.u32 %v140_v4, %v139_v3  ;;  %v143_v9 = vadd.s32 %v138_v1, %v750_v31 }
  0x8c   :  { %v142_v7 = vxor.u32 %v141_v6, %v138_v1 }
  0x8e   :  { %v144_v10 = vadd.s32 %v142_v7, %v721_v2 }
  0x90   :  { %v145_v11 = vadd.s32 5, %v144_v10 }
  0x92   :  { %v146_v13 = vxor.u32 %v145_v11, %v143_v9 }
  0x94   :  { %147 = set.rngseed %v146_v13 }
  0x95   :  { %v148_v25 = vrng }
  0x96   :  { %v149_v26 = vrng  ;;  %v152_v40 = vand.u32 8388607, %v148_v25 }
  0x97   :  { %v150_v27 = vrng  ;;  %v153_v41 = vand.u32 8388607, %v149_v26 }
  0x98   :  { %v151_v32 = vrng  ;;  %v154_v38 = vand.u32 8388607, %v150_v27  ;;  %v156_v44 = vcvt.s32.f32 %v152_v40 }
  0x99   :  { %v155_v39 = vand.u32 8388607, %v151_v32  ;;  %v157_v45 = vcvt.s32.f32 %v153_v41 }
  0x9a   :  { %v158_v42 = vcvt.s32.f32 %v154_v38  ;;  %v160_v49 = vmul.f32 1.1920929e-07, %v156_v44 }
  0x9b   :  { %v159_v43 = vcvt.s32.f32 %v155_v39  ;;  %v161_v50 = vmul.f32 1.1920929e-07, %v157_v45 }
  0x9c   :  { %v162_v46 = vmul.f32 1.1920929e-07, %v158_v42 }
  0x9d   :  { %v163_v47 = vmul.f32 1.1920929e-07, %v159_v43 }
  0xf5   :  { %v576_v15 = vpop.f32.mrb[0].mxu0 }
  0xf6   :  { %v311_v16 = vadd.f32 %v576_v15, %v502_v14  ;;  %v302_v31 = vpop.f32.mrb[1].mxu0 }
  0xf7   :  { %v303_v17 = vadd.f32 %v502_v14, %v302_v31  ;;  %v577_v2 = vpop.f32.mrb[2].mxu0 }
  0xf8   :  { %v515_v18 = vmul.f32 -1.442695, %v311_v16  ;;  %v314_v19 = vadd.f32 %v577_v2, %v502_v14  ;;  %v305_v20 = vpop.f32.mrb[3].mxu0 }
  0xf9   :  { %v513_v21 = vmul.f32 -1.442695, %v303_v17  ;;  %v306_v22 = vadd.f32 %v502_v14, %v305_v20 }
  0xfa   :  { %620 = vpow2.f32 %v515_v18  ;;  %v516_v23 = vmul.f32 -1.442695, %v314_v19 }
  0xfb   :  { %622 = vpow2.f32 %v513_v21  ;;  %v514_v24 = vmul.f32 -1.442695, %v306_v22 }
  0xfc   :  { %624 = vpow2.f32 %v516_v23 }
  0xfd   :  { %626 = vpow2.f32 %v514_v24 }
 0x104   :  { %v621_v28 = vpop.eup %620 }
 0x105   :  { %v623_v29 = vpop.eup %622  ;;  %v331_v30 = vadd.f32 1.0, %v621_v28 }
 0x106   :  { %v625_v33 = vpop.eup %624  ;;  %v329_v34 = vadd.f32 1.0, %v623_v29 }
 0x107   :  { %v627_v35 = vpop.eup %626  ;;  %628 = vrcp.f32 %v331_v30  ;;  %v332_v36 = vadd.f32 1.0, %v625_v33 }
 0x108   :  { %630 = vrcp.f32 %v329_v34  ;;  %v330_v37 = vadd.f32 1.0, %v627_v35 }
 0x109   :  { %632 = vrcp.f32 %v332_v36 }
 0x10a   :  { %634 = vrcp.f32 %v330_v37 }
 0x111   :  { %v629_v48 = vpop.eup %628 }
 0x112   :  { %v631_v51 = vpop.eup %630  ;;  %vm343_vm0 = vcmp.lt.f32.partialorder %v162_v46, %v629_v48 }
 0x113   :  { %v633_v52 = vpop.eup %632  ;;  %vm341_vm2 = vcmp.lt.f32.partialorder %v160_v49, %v631_v51 }
 0x114   :  { %v635_v53 = vpop.eup %634  ;;  %vm344_vm1 = vcmp.lt.f32.partialorder %v163_v47, %v633_v52 }
 0x115   :  { %vm342_vm3 = vcmp.lt.f32.partialorder %v161_v50, %v635_v53  ;;  %vm532_vm4 = vmpackc.low %vm344_vm1, %vm343_vm0 }
 0x116   :  { %vm530_vm5 = vmpackc.low %vm342_vm3, %vm341_vm2 }
 0x117   :  { %594 = vmatprep.mubr.msk.bf16.mxu1 %vm530_vm5, %v676_v54 }
 0x118   :  { %595 = vmatmul.mubr.msk.bf16.vlgmr.msra.gmra.mrb[0].mxu1 %vm532_vm4, %v676_v54 }
 0x1eb   :  { %v596_v56 = vpop.f32.mrb[0].mxu1 }
 0x1ec   :  { %v452_v57 = vadd.f32 %v596_v56, %v521_v55  ;;  %v443_v58 = vpop.f32.mrb[1].mxu1 }
 0x1ed   :  { %v444_v59 = vadd.f32 %v521_v55, %v443_v58  ;;  %v597_v60 = vpop.f32.mrb[2].mxu1 }
 0x1ee   :  { %v536_v61 = vmul.f32 -1.442695, %v452_v57  ;;  %v455_v62 = vadd.f32 %v597_v60, %v521_v55  ;;  %v446_v63 = vpop.f32.mrb[3].mxu1 }
 0x1ef   :  { %v534_v0 = vmul.f32 -1.442695, %v444_v59  ;;  %v447_v1 = vadd.f32 %v521_v55, %v446_v63 }
 0x1f0   :  { %636 = vpow2.f32 %v536_v61  ;;  %v537_v3 = vmul.f32 -1.442695, %v455_v62 }
 0x1f1   :  { %638 = vpow2.f32 %v534_v0  ;;  %v535_v4 = vmul.f32 -1.442695, %v447_v1 }
 0x1f2   :  { %640 = vpow2.f32 %v537_v3 }
 0x1f3   :  { %642 = vpow2.f32 %v535_v4 }
 0x1fa   :  { %v637_v5 = vpop.eup %636 }
 0x1fb   :  { %v639_v6 = vpop.eup %638  ;;  %v472_v7 = vadd.f32 1.0, %v637_v5 }
 0x1fc   :  { %v641_v8 = vpop.eup %640  ;;  %v470_v9 = vadd.f32 1.0, %v639_v6 }
 0x1fd   :  { %v643_v10 = vpop.eup %642  ;;  %644 = vrcp.f32 %v472_v7  ;;  %v473_v11 = vadd.f32 1.0, %v641_v8 }
 0x1fe   :  { %646 = vrcp.f32 %v470_v9  ;;  %v471_v12 = vadd.f32 1.0, %v643_v10 }
 0x1ff   :  { %648 = vrcp.f32 %v473_v11 }
 0x200   :  { %650 = vrcp.f32 %v471_v12 }
 0x207   :  { %v645_v13 = vpop.eup %644 }
 0x208   :  { %v647_v14 = vpop.eup %646  ;;  %484 = vst [vmem:[#allocation4 + $0x10] sm:$0xff] %v645_v13 }
 0x209   :  { %v649_v15 = vpop.eup %648  ;;  %482 = vst [vmem:[#allocation4] sm:$0xff] %v647_v14 }
 0x20a   :  { %v651_v16 = vpop.eup %650  ;;  %485 = vst [vmem:[#allocation4 + $0x18] sm:$0xff] %v649_v15 }
 0x20b   :  { %483 = vst [vmem:[#allocation4 + $0x8] sm:$0xff] %v651_v16 }
 0x20c   :  { %663 = shalt.err (!%p660_p4)
}
 0x20d   :  { %s664_s13 = scalar_lea.hbm %s813_s6, 512 }
 0x20e   :  { %p665_p5 = scmp.ne.s32.totalorder %s813_s6, %s664_s13  ;;  %p668_p6 = scmp.lt.u32.totalorder %s664_s13, %s813_s6 }
 0x210   :  { %p670_p7 = pnand %p668_p6, %p665_p5 }
 0x212   :  { %673 = shalt.err (!%p670_p7)
}
 0x213   :  { %s678_s1 = smov 128   ;;  %s679_s2 = smov 8  }
 0x214   :  { %497 = dma.vmem_to_hbm [thread:$0]  %s492_s9, 512, %s813_s6, [#allocation5], %s678_s1, %s678_s1, %s679_s2  }
 0x215   :  { %674 = dma.done.wait [#allocation5], 512  }
 0x216   :  { %675 = vsyncadd [#allocation5], 4294966784 }
 0x217   :  { %501 = vsyncpa [#allocation5], 1 }

// kernel: rbm_forward.1
= control target key start
LH: loop header
LB: loop body
LE: loop exit
PB: predicated region body
PF: predicated region fallthrough
CT: control target
= control target key end

     0   :  { %v26_v1 = vlaneseq  ;;  %s807_s0 = inlined_call_operand.<no memory space> [shape: s32[1], index: 0, kind: input, shape index: {}]   ;;  %s808_s1 = inlined_call_operand.vmem [shape: bf16[32,128], index: 1, kind: input, shape index: {}]   ;;  %s809_s2 = inlined_call_operand.vmem [shape: bf16[128,128], index: 2, kind: input, shape index: {}]   ;;  %s810_s3 = inlined_call_operand.vmem [shape: bf16[128,128], index: 3, kind: input, shape index: {}]   ;;  %s811_s4 = inlined_call_operand.vmem [shape: f32[1,128], index: 4, kind: input, shape index: {}]   ;;  %s812_s5 = inlined_call_operand.vmem [shape: f32[1,128], index: 5, kind: input, shape index: {}]   ;;  %s813_s6 = inlined_call_operand.hbm [shape: f32[32,128], index: 6, kind: output, shape index: {}]  }
   0x1   :  { %v602_v0 = vld [vmem:[%s809_s2] sm:$0xff]   ;;  %v721_v2 = vstv %s807_s0  ;;  %v603_v3 = vld [vmem:[%s809_s2 + $0x8] sm:$0xff]   ;;  %v604_v5 = vld [vmem:[%s809_s2 + $0x10] sm:$0xff]  }
   0x2   :  { %558 = vmatprep.subr.bf16.mxu0 %v602_v0  ;;  %v30_v4 = vadd.s32 %v721_v2, %v26_v1  ;;  %v605_v9 = vld [vmem:[%s809_s2 + $0x18] sm:$0xff]   ;;  %v610_v11 = vld [vmem:[%s808_s1] sm:$0xff]  }
   0x3   :  { %559 = vmatpush3.bf16.msra.mxu0 %v602_v0  ;;  %v606_v13 = vld [vmem:[%s809_s2 + $0x20] sm:$0xff]   ;;  %574 = vmatprep.mubr.bf16.mxu0 %v610_v11 }
   0x4   :  { %560 = vmatprep.subr.bf16.mxu0 %v603_v3  ;;  %v32_v6 = vshll.u32 %v30_v4, 13  ;;  %v31_v7 = vadd.s32 %v30_v4, %v30_v4  ;;  %v33_v8 = vshrl.u32 %v30_v4, 19 }
   0x6   :  { %v34_v10 = vor.u32 %v33_v8, %v32_v6 }
   0x7   :  { %561 = vmatpush3.bf16.msra.mxu0 %v603_v3 }
   0x8   :  { %562 = vmatprep.subr.bf16.mxu0 %v604_v5  ;;  %v35_v12 = vxor.u32 %v34_v10, %v31_v7 }
   0xa   :  { %v36_v14 = vadd.s32 %v35_v12, %v31_v7  ;;  %v37_v15 = vshll.u32 %v35_v12, 15  ;;  %v38_v16 = vshrl.u32 %v35_v12, 17 }
   0xb   :  { %563 = vmatpush3.bf16.msra.mxu0 %v604_v5 }
   0xc   :  { %564 = vmatprep.subr.bf16.mxu0 %v605_v9  ;;  %v39_v17 = vor.u32 %v38_v16, %v37_v15 }
   0xf   :  { %565 = vmatpush3.bf16.msra.mxu0 %v605_v9 }
  0x10   :  { %12 = vsyncpa [#allocation5], 0  ;;  %566 = vmatprep.subr.bf16.mxu0 %v606_v13  ;;  %v607_v18 = vld [vmem:[%s809_s2 + $0x28] sm:$0xff]   ;;  %v40_v19 = vxor.u32 %v39_v17, %v36_v14  ;;  %v608_v23 = vld [vmem:[%s809_s2 + $0x30] sm:$0xff]   ;;  %v28_v25 = vxor.u32 %v721_v2, %v721_v2 }
  0x11   :  { %v609_v27 = vld [vmem:[%s809_s2 + $0x38] sm:$0xff]   ;;  %v611_v34 = vld [vmem:[%s808_s1 + $0x8] sm:$0xff]  }
  0x12   :  { %v41_v20 = vadd.s32 %v40_v19, %v36_v14  ;;  %v42_v21 = vshll.u32 %v40_v19, 26  ;;  %v43_v22 = vshrl.u32 %v40_v19, 6  ;;  %v750_v31 = vxor.u32 466688986, %v28_v25 }
  0x13   :  { %567 = vmatpush3.bf16.msra.mxu0 %v606_v13 }
  0x14   :  { %568 = vmatprep.subr.bf16.mxu0 %v607_v18  ;;  %v44_v24 = vor.u32 %v43_v22, %v42_v21 }
  0x16   :  { %v45_v26 = vxor.u32 %v44_v24, %v41_v20 }
  0x17   :  { %569 = vmatpush3.bf16.msra.mxu0 %v607_v18 }
  0x18   :  { %570 = vmatprep.subr.bf16.mxu0 %v608_v23  ;;  %v46_v28 = vadd.s32 %v45_v26, %v41_v20  ;;  %v47_v29 = vshll.u32 %v45_v26, 6  ;;  %v48_v30 = vshrl.u32 %v45_v26, 26 }
  0x1a   :  { %v49_v32 = vor.u32 %v48_v30, %v47_v29  ;;  %v51_v35 = vadd.s32 %v46_v28, %v721_v2 }
  0x1b   :  { %571 = vmatpush3.bf16.msra.mxu0 %v608_v23 }
  0x1c   :  { %572 = vmatprep.subr.bf16.mxu0 %v609_v27  ;;  %v50_v33 = vxor.u32 %v49_v32, %v46_v28 }
  0x1e   :  { %v52_v36 = vadd.s32 %v50_v33, %v750_v31 }
  0x1f   :  { %573 = vmatpush3.bf16.msra.mxu0 %v609_v27 }
  0x20   :  { %v53_v37 = vadd.s32 1, %v52_v36 }
  0x22   :  { %575 = vmatmul.mubr.bf16.vlgmr.msra.gmra.mrb[0].mxu0 %v611_v34  ;;  %v54_v38 = vadd.s32 %v53_v37, %v51_v35  ;;  %v55_v39 = vshll.u32 %v53_v37, 17  ;;  %v56_v40 = vshrl.u32 %v53_v37, 15 }
  0x24   :  { %v57_v41 = vor.u32 %v56_v40, %v55_v39 }
  0x26   :  { %v58_v42 = vxor.u32 %v57_v41, %v54_v38 }
  0x28   :  { %v59_v43 = vadd.s32 %v58_v42, %v54_v38  ;;  %v60_v44 = vshll.u32 %v58_v42, 29  ;;  %v61_v45 = vshrl.u32 %v58_v42, 3 }
  0x2a   :  { %v62_v46 = vor.u32 %v61_v45, %v60_v44  ;;  %v612_v45 = vld [vmem:[%s810_s3] sm:$0xff]  }
  0x2b   :  { %578 = vmatprep.subr.bf16.mxu1 %v612_v45 }
  0x2c   :  { %v63_v47 = vxor.u32 %v62_v46, %v59_v43  ;;  %579 = vmatpush3.bf16.msra.mxu1 %v612_v45 }
  0x2e   :  { %v64_v48 = vadd.s32 %v63_v47, %v59_v43  ;;  %v65_v49 = vshll.u32 %v63_v47, 16  ;;  %v66_v50 = vshrl.u32 %v63_v47, 16 }
  0x30   :  { %v67_v51 = vor.u32 %v66_v50, %v65_v49  ;;  %v613_v50 = vld [vmem:[%s810_s3 + $0x8] sm:$0xff]  }
  0x31   :  { %580 = vmatprep.subr.bf16.mxu1 %v613_v50 }
  0x32   :  { %v68_v52 = vxor.u32 %v67_v51, %v64_v48  ;;  %581 = vmatpush3.bf16.msra.mxu1 %v613_v50 }
  0x34   :  { %v69_v53 = vadd.s32 %v68_v52, %v64_v48  ;;  %v70_v54 = vshll.u32 %v68_v52, 24  ;;  %v71_v55 = vshrl.u32 %v68_v52, 8 }
  0x36   :  { %v72_v56 = vor.u32 %v71_v55, %v70_v54  ;;  %v74_v58 = vadd.s32 %v69_v53, %v750_v31  ;;  %v614_v55 = vld [vmem:[%s810_s3 + $0x10] sm:$0xff]  }
  0x37   :  { %582 = vmatprep.subr.bf16.mxu1 %v614_v55 }
  0x38   :  { %v73_v57 = vxor.u32 %v72_v56, %v69_v53  ;;  %583 = vmatpush3.bf16.msra.mxu1 %v614_v55  ;;  %v521_v55 = vld [vmem:[%s812_s5] ss:$0 sm:$0xff]  ;;  %s677_s5 = smov [#allocation4]  }
  0x39   :  { %s491_s9 = sshll.u32 %s677_s5, 4  ;;  %s492_s9 = int_to_ptr.vmem [resolvable:$true] %s491_s9 }
  0x3a   :  { %v75_v59 = vadd.s32 %v73_v57, %v721_v2  ;;  %s652_s10 = scalar_lea.vmem %s492_s9, 512  ;;  %p657_p1 = scmp.lt.s32.totalorder %s492_s9, %s492_s9 }
  0x3b   :  { %p653_p0 = scmp.ne.s32.totalorder %s492_s9, %s652_s10  ;;  %p658_p2 = scmp.lt.s32.totalorder %s652_s10, %s652_s10 }
  0x3c   :  { %v76_v60 = vadd.s32 2, %v75_v59 }
  0x3d   :  { %p659_p3 = por %p658_p2, %p657_p1 }
  0x3e   :  { %v77_v61 = vadd.s32 %v76_v60, %v74_v58  ;;  %v78_v62 = vshll.u32 %v76_v60, 13  ;;  %v79_v63 = vshrl.u32 %v76_v60, 19  ;;  %v615_v58 = vld [vmem:[%s810_s3 + $0x18] sm:$0xff]  }
  0x3f   :  { %584 = vmatprep.subr.bf16.mxu1 %v615_v58  ;;  %p660_p4 = pnand %p659_p3, %p653_p0 }
  0x40   :  { %v80_v0 = vor.u32 %v79_v63, %v78_v62  ;;  %585 = vmatpush3.bf16.msra.mxu1 %v615_v58  ;;  %v616_v63 = vld [vmem:[%s810_s3 + $0x20] sm:$0xff]  }
  0x41   :  { %586 = vmatprep.subr.bf16.mxu1 %v616_v63 }
  0x42   :  { %v81_v1 = vxor.u32 %v80_v0, %v77_v61 }
  0x44   :  { %v82_v3 = vadd.s32 %v81_v1, %v77_v61  ;;  %v83_v4 = vshll.u32 %v81_v1, 15  ;;  %v84_v5 = vshrl.u32 %v81_v1, 17  ;;  %587 = vmatpush3.bf16.msra.mxu1 %v616_v63 }
  0x46   :  { %v85_v6 = vor.u32 %v84_v5, %v83_v4  ;;  %v617_v5 = vld [vmem:[%s810_s3 + $0x28] sm:$0xff]  }
  0x47   :  { %588 = vmatprep.subr.bf16.mxu1 %v617_v5 }
  0x48   :  { %v86_v7 = vxor.u32 %v85_v6, %v82_v3  ;;  %589 = vmatpush3.bf16.msra.mxu1 %v617_v5 }
  0x4a   :  { %v87_v8 = vadd.s32 %v86_v7, %v82_v3  ;;  %v88_v9 = vshll.u32 %v86_v7, 26  ;;  %v89_v10 = vshrl.u32 %v86_v7, 6 }
  0x4c   :  { %v90_v11 = vor.u32 %v89_v10, %v88_v9 }
  0x4e   :  { %v91_v12 = vxor.u32 %v90_v11, %v87_v8 }
  0x50   :  { %v92_v13 = vadd.s32 %v91_v12, %v87_v8  ;;  %v93_v14 = vshll.u32 %v91_v12, 6  ;;  %v94_v15 = vshrl.u32 %v91_v12, 26  ;;  %v618_v8 = vld [vmem:[%s810_s3 + $0x30] sm:$0xff]   ;;  %v619_v12 = vld [vmem:[%s810_s3 + $0x38] sm:$0xff]  }
  0x51   :  { %590 = vmatprep.subr.bf16.mxu1 %v618_v8 }
  0x52   :  { %v95_v16 = vor.u32 %v94_v15, %v93_v14  ;;  %v97_v18 = vadd.s32 %v92_v13, %v721_v2  ;;  %591 = vmatpush3.bf16.msra.mxu1 %v618_v8  ;;  %v502_v14 = vld [vmem:[%s811_s4] ss:$0 sm:$0xff] }
  0x53   :  { %592 = vmatprep.subr.bf16.mxu1 %v619_v12 }
  0x54   :  { %v96_v17 = vxor.u32 %v95_v16, %v92_v13 }
  0x56   :  { %v98_v19 = vadd.s32 %v96_v17, %v721_v2  ;;  %593 = vmatpush3.bf16.msra.mxu1 %v619_v12 }
  0x58   :  { %v99_v20 = vadd.s32 3, %v98_v19 }
  0x5a   :  { %v100_v21 = vadd.s32 %v99_v20, %v97_v18  ;;  %v101_v22 = vshll.u32 %v99_v20, 17  ;;  %v102_v23 = vshrl.u32 %v99_v20, 15 }
  0x5c   :  { %v103_v24 = vor.u32 %v102_v23, %v101_v22 }
  0x5e   :  { %v104_v25 = vxor.u32 %v103_v24, %v100_v21 }
  0x60   :  { %v105_v26 = vadd.s32 %v104_v25, %v100_v21  ;;  %v106_v27 = vshll.u32 %v104_v25, 29  ;;  %v107_v28 = vshrl.u32 %v104_v25, 3 }
  0x62   :  { %v108_v29 = vor.u32 %v107_v28, %v106_v27 }
  0x64   :  { %v109_v30 = vxor.u32 %v108_v29, %v105_v26 }
  0x66   :  { %v110_v32 = vadd.s32 %v109_v30, %v105_v26  ;;  %v111_v33 = vshll.u32 %v109_v30, 16  ;;  %v112_v34 = vshrl.u32 %v109_v30, 16 }
  0x68   :  { %v113_v35 = vor.u32 %v112_v34, %v111_v33 }
  0x6a   :  { %v114_v36 = vxor.u32 %v113_v35, %v110_v32 }
  0x6c   :  { %v115_v37 = vadd.s32 %v114_v36, %v110_v32  ;;  %v116_v38 = vshll.u32 %v114_v36, 24  ;;  %v117_v39 = vshrl.u32 %v114_v36, 8 }
  0x6e   :  { %v118_v40 = vor.u32 %v117_v39, %v116_v38  ;;  %v120_v42 = vadd.s32 %v115_v37, %v721_v2 }
  0x70   :  { %v119_v41 = vxor.u32 %v118_v40, %v115_v37 }
  0x72   :  { %v121_v43 = vadd.s32 %v119_v41, %v750_v31 }
  0x74   :  { %v122_v44 = vadd.s32 4, %v121_v43 }
  0x76   :  { %v123_v46 = vadd.s32 %v122_v44, %v120_v42  ;;  %v124_v47 = vshll.u32 %v122_v44, 13  ;;  %v125_v48 = vshrl.u32 %v122_v44, 19 }
  0x78   :  { %v126_v49 = vor.u32 %v125_v48, %v124_v47 }
  0x7a   :  { %v127_v51 = vxor.u32 %v126_v49, %v123_v46 }
  0x7c   :  { %v128_v52 = vadd.s32 %v127_v51, %v123_v46  ;;  %v129_v53 = vshll.u32 %v127_v51, 15  ;;  %v130_v54 = vshrl.u32 %v127_v51, 17 }
  0x7e   :  { %v131_v56 = vor.u32 %v130_v54, %v129_v53  ;;  %v676_v54 = vmov 1.0|1.0  }
  0x80   :  { %v132_v57 = vxor.u32 %v131_v56, %v128_v52 }
  0x82   :  { %v133_v59 = vadd.s32 %v132_v57, %v128_v52  ;;  %v134_v60 = vshll.u32 %v132_v57, 26  ;;  %v135_v61 = vshrl.u32 %v132_v57, 6 }
  0x84   :  { %v136_v62 = vor.u32 %v135_v61, %v134_v60 }
  0x86   :  { %v137_v0 = vxor.u32 %v136_v62, %v133_v59 }
  0x88   :  { %v138_v1 = vadd.s32 %v137_v0, %v133_v59  ;;  %v139_v3 = vshll.u32 %v137_v0, 6  ;;  %v140_v4 = vshrl.u32 %v137_v0, 26 }
  0x8a   :  { %v141_v6 = vor.u32 %v140_v4, %v139_v3  ;;  %v143_v9 = vadd.s32 %v138_v1, %v750_v31 }
  0x8c   :  { %v142_v7 = vxor.u32 %v141_v6, %v138_v1 }
  0x8e   :  { %v144_v10 = vadd.s32 %v142_v7, %v721_v2 }
  0x90   :  { %v145_v11 = vadd.s32 5, %v144_v10 }
  0x92   :  { %v146_v13 = vxor.u32 %v145_v11, %v143_v9 }
  0x94   :  { %147 = set.rngseed %v146_v13 }
  0x95   :  { %v148_v25 = vrng }
  0x96   :  { %v149_v26 = vrng  ;;  %v152_v40 = vand.u32 8388607, %v148_v25 }
  0x97   :  { %v150_v27 = vrng  ;;  %v153_v41 = vand.u32 8388607, %v149_v26 }
  0x98   :  { %v151_v32 = vrng  ;;  %v154_v38 = vand.u32 8388607, %v150_v27  ;;  %v156_v44 = vcvt.s32.f32 %v152_v40 }
  0x99   :  { %v155_v39 = vand.u32 8388607, %v151_v32  ;;  %v157_v45 = vcvt.s32.f32 %v153_v41 }
  0x9a   :  { %v158_v42 = vcvt.s32.f32 %v154_v38  ;;  %v160_v49 = vmul.f32 1.1920929e-07, %v156_v44 }
  0x9b   :  { %v159_v43 = vcvt.s32.f32 %v155_v39  ;;  %v161_v50 = vmul.f32 1.1920929e-07, %v157_v45 }
  0x9c   :  { %v162_v46 = vmul.f32 1.1920929e-07, %v158_v42 }
  0x9d   :  { %v163_v47 = vmul.f32 1.1920929e-07, %v159_v43 }
  0xf5   :  { %v576_v15 = vpop.f32.mrb[0].mxu0 }
  0xf6   :  { %v311_v16 = vadd.f32 %v576_v15, %v502_v14  ;;  %v302_v31 = vpop.f32.mrb[1].mxu0 }
  0xf7   :  { %v303_v17 = vadd.f32 %v502_v14, %v302_v31  ;;  %v577_v2 = vpop.f32.mrb[2].mxu0 }
  0xf8   :  { %v515_v18 = vmul.f32 -1.442695, %v311_v16  ;;  %v314_v19 = vadd.f32 %v577_v2, %v502_v14  ;;  %v305_v20 = vpop.f32.mrb[3].mxu0 }
  0xf9   :  { %v513_v21 = vmul.f32 -1.442695, %v303_v17  ;;  %v306_v22 = vadd.f32 %v502_v14, %v305_v20 }
  0xfa   :  { %620 = vpow2.f32 %v515_v18  ;;  %v516_v23 = vmul.f32 -1.442695, %v314_v19 }
  0xfb   :  { %622 = vpow2.f32 %v513_v21  ;;  %v514_v24 = vmul.f32 -1.442695, %v306_v22 }
  0xfc   :  { %624 = vpow2.f32 %v516_v23 }
  0xfd   :  { %626 = vpow2.f32 %v514_v24 }
 0x104   :  { %v621_v28 = vpop.eup %620 }
 0x105   :  { %v623_v29 = vpop.eup %622  ;;  %v331_v30 = vadd.f32 1.0, %v621_v28 }
 0x106   :  { %v625_v33 = vpop.eup %624  ;;  %v329_v34 = vadd.f32 1.0, %v623_v29 }
 0x107   :  { %v627_v35 = vpop.eup %626  ;;  %628 = vrcp.f32 %v331_v30  ;;  %v332_v36 = vadd.f32 1.0, %v625_v33 }
 0x108   :  { %630 = vrcp.f32 %v329_v34  ;;  %v330_v37 = vadd.f32 1.0, %v627_v35 }
 0x109   :  { %632 = vrcp.f32 %v332_v36 }
 0x10a   :  { %634 = vrcp.f32 %v330_v37 }
 0x111   :  { %v629_v48 = vpop.eup %628 }
 0x112   :  { %v631_v51 = vpop.eup %630  ;;  %vm343_vm0 = vcmp.lt.f32.partialorder %v162_v46, %v629_v48 }
 0x113   :  { %v633_v52 = vpop.eup %632  ;;  %vm341_vm2 = vcmp.lt.f32.partialorder %v160_v49, %v631_v51 }
 0x114   :  { %v635_v53 = vpop.eup %634  ;;  %vm344_vm1 = vcmp.lt.f32.partialorder %v163_v47, %v633_v52 }
 0x115   :  { %vm342_vm3 = vcmp.lt.f32.partialorder %v161_v50, %v635_v53  ;;  %vm532_vm4 = vmpackc.low %vm344_vm1, %vm343_vm0 }
 0x116   :  { %vm530_vm5 = vmpackc.low %vm342_vm3, %vm341_vm2 }
 0x117   :  { %594 = vmatprep.mubr.msk.bf16.mxu1 %vm530_vm5, %v676_v54 }
 0x118   :  { %595 = vmatmul.mubr.msk.bf16.vlgmr.msra.gmra.mrb[0].mxu1 %vm532_vm4, %v676_v54 }
 0x1eb   :  { %v596_v56 = vpop.f32.mrb[0].mxu1 }
 0x1ec   :  { %v452_v57 = vadd.f32 %v596_v56, %v521_v55  ;;  %v443_v58 = vpop.f32.mrb[1].mxu1 }
 0x1ed   :  { %v444_v59 = vadd.f32 %v521_v55, %v443_v58  ;;  %v597_v60 = vpop.f32.mrb[2].mxu1 }
 0x1ee   :  { %v536_v61 = vmul.f32 -1.442695, %v452_v57  ;;  %v455_v62 = vadd.f32 %v597_v60, %v521_v55  ;;  %v446_v63 = vpop.f32.mrb[3].mxu1 }
 0x1ef   :  { %v534_v0 = vmul.f32 -1.442695, %v444_v59  ;;  %v447_v1 = vadd.f32 %v521_v55, %v446_v63 }
 0x1f0   :  { %636 = vpow2.f32 %v536_v61  ;;  %v537_v3 = vmul.f32 -1.442695, %v455_v62 }
 0x1f1   :  { %638 = vpow2.f32 %v534_v0  ;;  %v535_v4 = vmul.f32 -1.442695, %v447_v1 }
 0x1f2   :  { %640 = vpow2.f32 %v537_v3 }
 0x1f3   :  { %642 = vpow2.f32 %v535_v4 }
 0x1fa   :  { %v637_v5 = vpop.eup %636 }
 0x1fb   :  { %v639_v6 = vpop.eup %638  ;;  %v472_v7 = vadd.f32 1.0, %v637_v5 }
 0x1fc   :  { %v641_v8 = vpop.eup %640  ;;  %v470_v9 = vadd.f32 1.0, %v639_v6 }
 0x1fd   :  { %v643_v10 = vpop.eup %642  ;;  %644 = vrcp.f32 %v472_v7  ;;  %v473_v11 = vadd.f32 1.0, %v641_v8 }
 0x1fe   :  { %646 = vrcp.f32 %v470_v9  ;;  %v471_v12 = vadd.f32 1.0, %v643_v10 }
 0x1ff   :  { %648 = vrcp.f32 %v473_v11 }
 0x200   :  { %650 = vrcp.f32 %v471_v12 }
 0x207   :  { %v645_v13 = vpop.eup %644 }
 0x208   :  { %v647_v14 = vpop.eup %646  ;;  %484 = vst [vmem:[#allocation4 + $0x10] sm:$0xff] %v645_v13 }
 0x209   :  { %v649_v15 = vpop.eup %648  ;;  %482 = vst [vmem:[#allocation4] sm:$0xff] %v647_v14 }
 0x20a   :  { %v651_v16 = vpop.eup %650  ;;  %485 = vst [vmem:[#allocation4 + $0x18] sm:$0xff] %v649_v15 }
 0x20b   :  { %483 = vst [vmem:[#allocation4 + $0x8] sm:$0xff] %v651_v16 }
 0x20c   :  { %663 = shalt.err (!%p660_p4)
}
 0x20d   :  { %s664_s13 = scalar_lea.hbm %s813_s6, 512 }
 0x20e   :  { %p665_p5 = scmp.ne.s32.totalorder %s813_s6, %s664_s13  ;;  %p668_p6 = scmp.lt.u32.totalorder %s664_s13, %s813_s6 }
 0x210   :  { %p670_p7 = pnand %p668_p6, %p665_p5 }
 0x212   :  { %673 = shalt.err (!%p670_p7)
}
 0x213   :  { %s678_s1 = smov 128   ;;  %s679_s2 = smov 8  }
 0x214   :  { %497 = dma.vmem_to_hbm [thread:$0]  %s492_s9, 512, %s813_s6, [#allocation5], %s678_s1, %s678_s1, %s679_s2  }
 0x215   :  { %674 = dma.done.wait [#allocation5], 512  }
 0x216   :  { %675 = vsyncadd [#allocation5], 4294966784 }
 0x217   :  { %501 = vsyncpa [#allocation5], 1 }

// kernel: rbm_forward.1
= control target key start
LH: loop header
LB: loop body
LE: loop exit
PB: predicated region body
PF: predicated region fallthrough
CT: control target
= control target key end

     0   :  { %s671_s0 = inlined_call_operand.vmem [shape: bf16[32,128], index: 0, kind: input, shape index: {}]   ;;  %s672_s1 = inlined_call_operand.vmem [shape: bf16[32,128], index: 1, kind: input, shape index: {}]   ;;  %s673_s2 = inlined_call_operand.vmem [shape: bf16[128,128], index: 2, kind: input, shape index: {}]   ;;  %s674_s3 = inlined_call_operand.vmem [shape: bf16[128,128], index: 3, kind: input, shape index: {}]   ;;  %s675_s4 = inlined_call_operand.vmem [shape: f32[1,128], index: 4, kind: input, shape index: {}]   ;;  %s676_s5 = inlined_call_operand.vmem [shape: f32[1,128], index: 5, kind: input, shape index: {}]   ;;  %s677_s6 = inlined_call_operand.hbm [shape: f32[32,128], index: 6, kind: output, shape index: {}]  }
   0x1   :  { %v480_v0 = vld [vmem:[%s673_s2] sm:$0xff]   ;;  %v481_v1 = vld [vmem:[%s673_s2 + $0x8] sm:$0xff]   ;;  %v482_v2 = vld [vmem:[%s673_s2 + $0x10] sm:$0xff]  }
   0x2   :  { %436 = vmatprep.subr.bf16.mxu0 %v480_v0  ;;  %v483_v3 = vld [vmem:[%s673_s2 + $0x18] sm:$0xff]   ;;  %v488_v4 = vld [vmem:[%s671_s0] sm:$0xff]  }
   0x3   :  { %437 = vmatpush3.bf16.msra.mxu0 %v480_v0  ;;  %v484_v5 = vld [vmem:[%s673_s2 + $0x20] sm:$0xff]   ;;  %452 = vmatprep.mubr.bf16.mxu0 %v488_v4 }
   0x4   :  { %438 = vmatprep.subr.bf16.mxu0 %v481_v1 }
   0x7   :  { %439 = vmatpush3.bf16.msra.mxu0 %v481_v1 }
   0x8   :  { %440 = vmatprep.subr.bf16.mxu0 %v482_v2 }
   0xb   :  { %441 = vmatpush3.bf16.msra.mxu0 %v482_v2 }
   0xc   :  { %442 = vmatprep.subr.bf16.mxu0 %v483_v3 }
   0xf   :  { %443 = vmatpush3.bf16.msra.mxu0 %v483_v3 }
  0x10   :  { %11 = vsyncpa [#allocation3], 0  ;;  %444 = vmatprep.subr.bf16.mxu0 %v484_v5  ;;  %v485_v6 = vld [vmem:[%s673_s2 + $0x28] sm:$0xff]   ;;  %v486_v7 = vld [vmem:[%s673_s2 + $0x30] sm:$0xff]   ;;  %v554_v49 = vmov 1.0|1.0  }
  0x11   :  { %v487_v8 = vld [vmem:[%s673_s2 + $0x38] sm:$0xff]   ;;  %v489_v9 = vld [vmem:[%s671_s0 + $0x8] sm:$0xff]   ;;  %v490_v10 = vld [vmem:[%s674_s3] sm:$0xff]  }
  0x12   :  { %456 = vmatprep.subr.bf16.mxu1 %v490_v10  ;;  %v491_v11 = vld [vmem:[%s674_s3 + $0x8] sm:$0xff]   ;;  %v492_v12 = vld [vmem:[%s674_s3 + $0x10] sm:$0xff]   ;;  %v493_v13 = vld [vmem:[%s674_s3 + $0x18] sm:$0xff]  }
  0x13   :  { %445 = vmatpush3.bf16.msra.mxu0 %v484_v5  ;;  %457 = vmatpush3.bf16.msra.mxu1 %v490_v10  ;;  %v494_v14 = vld [vmem:[%s674_s3 + $0x20] sm:$0xff]   ;;  %v495_v15 = vld [vmem:[%s674_s3 + $0x28] sm:$0xff]   ;;  %v496_v16 = vld [vmem:[%s674_s3 + $0x30] sm:$0xff]  }
  0x14   :  { %446 = vmatprep.subr.bf16.mxu0 %v485_v6  ;;  %458 = vmatprep.subr.bf16.mxu1 %v491_v11  ;;  %v497_v17 = vld [vmem:[%s674_s3 + $0x38] sm:$0xff]   ;;  %v371_v18 = vld [vmem:[%s675_s4] ss:$0 sm:$0xff]  ;;  %v415_v39 = vld [vmem:[%s672_s1 + $0x8] sm:$0xff]  }
  0x15   :  { %v408_v40 = vld [vmem:[%s672_s1] sm:$0xff]   ;;  %v413_v41 = vunpack.c.l.bf16 %v415_v39  ;;  %v414_v42 = vunpack.c.h.bf16 %v415_v39  ;;  %s555_s1 = smov [#allocation2]  }
  0x16   :  { %v409_v44 = vunpack.c.l.bf16 %v408_v40  ;;  %v410_v45 = vunpack.c.h.bf16 %v408_v40  ;;  %v390_v50 = vld [vmem:[%s676_s5] ss:$0 sm:$0xff]  ;;  %s360_s5 = sshll.u32 %s555_s1, 4  ;;  %s361_s5 = int_to_ptr.vmem [resolvable:$true] %s360_s5 }
  0x17   :  { %447 = vmatpush3.bf16.msra.mxu0 %v485_v6  ;;  %459 = vmatpush3.bf16.msra.mxu1 %v491_v11  ;;  %s530_s13 = scalar_lea.vmem %s361_s5, 512  ;;  %p535_p1 = scmp.lt.s32.totalorder %s361_s5, %s361_s5 }
  0x18   :  { %448 = vmatprep.subr.bf16.mxu0 %v486_v7  ;;  %460 = vmatprep.subr.bf16.mxu1 %v492_v12  ;;  %p531_p0 = scmp.ne.s32.totalorder %s361_s5, %s530_s13  ;;  %p536_p2 = scmp.lt.s32.totalorder %s530_s13, %s530_s13 }
  0x1a   :  { %p537_p3 = por %p536_p2, %p535_p1 }
  0x1b   :  { %449 = vmatpush3.bf16.msra.mxu0 %v486_v7  ;;  %461 = vmatpush3.bf16.msra.mxu1 %v492_v12 }
  0x1c   :  { %450 = vmatprep.subr.bf16.mxu0 %v487_v8  ;;  %462 = vmatprep.subr.bf16.mxu1 %v493_v13  ;;  %p538_p4 = pnand %p537_p3, %p531_p0 }
  0x1f   :  { %451 = vmatpush3.bf16.msra.mxu0 %v487_v8  ;;  %463 = vmatpush3.bf16.msra.mxu1 %v493_v13 }
  0x20   :  { %464 = vmatprep.subr.bf16.mxu1 %v494_v14 }
  0x22   :  { %453 = vmatmul.mubr.bf16.vlgmr.msra.gmra.mrb[0].mxu0 %v489_v9 }
  0x23   :  { %465 = vmatpush3.bf16.msra.mxu1 %v494_v14 }
  0x24   :  { %466 = vmatprep.subr.bf16.mxu1 %v495_v15 }
  0x27   :  { %467 = vmatpush3.bf16.msra.mxu1 %v495_v15 }
  0x28   :  { %468 = vmatprep.subr.bf16.mxu1 %v496_v16 }
  0x2b   :  { %469 = vmatpush3.bf16.msra.mxu1 %v496_v16 }
  0x2c   :  { %470 = vmatprep.subr.bf16.mxu1 %v497_v17 }
  0x2f   :  { %471 = vmatpush3.bf16.msra.mxu1 %v497_v17 }
  0xf5   :  { %v454_v19 = vpop.f32.mrb[0].mxu0 }
  0xf6   :  { %v180_v20 = vadd.f32 %v454_v19, %v371_v18  ;;  %v171_v21 = vpop.f32.mrb[1].mxu0 }
  0xf7   :  { %v172_v22 = vadd.f32 %v371_v18, %v171_v21  ;;  %v455_v23 = vpop.f32.mrb[2].mxu0 }
  0xf8   :  { %v384_v24 = vmul.f32 -1.442695, %v180_v20  ;;  %v183_v25 = vadd.f32 %v455_v23, %v371_v18  ;;  %v174_v26 = vpop.f32.mrb[3].mxu0 }
  0xf9   :  { %v382_v27 = vmul.f32 -1.442695, %v172_v22  ;;  %v175_v28 = vadd.f32 %v371_v18, %v174_v26 }
  0xfa   :  { %498 = vpow2.f32 %v384_v24  ;;  %v385_v29 = vmul.f32 -1.442695, %v183_v25 }
  0xfb   :  { %500 = vpow2.f32 %v382_v27  ;;  %v383_v30 = vmul.f32 -1.442695, %v175_v28 }
  0xfc   :  { %502 = vpow2.f32 %v385_v29 }
  0xfd   :  { %504 = vpow2.f32 %v383_v30 }
 0x104   :  { %v499_v31 = vpop.eup %498 }
 0x105   :  { %v501_v32 = vpop.eup %500  ;;  %v200_v33 = vadd.f32 1.0, %v499_v31 }
 0x106   :  { %v503_v34 = vpop.eup %502  ;;  %v198_v35 = vadd.f32 1.0, %v501_v32 }
 0x107   :  { %v505_v36 = vpop.eup %504  ;;  %506 = vrcp.f32 %v200_v33  ;;  %v201_v37 = vadd.f32 1.0, %v503_v34 }
 0x108   :  { %508 = vrcp.f32 %v198_v35  ;;  %v199_v38 = vadd.f32 1.0, %v505_v36 }
 0x109   :  { %510 = vrcp.f32 %v201_v37 }
 0x10a   :  { %512 = vrcp.f32 %v199_v38 }
 0x111   :  { %v507_v43 = vpop.eup %506 }
 0x112   :  { %v509_v46 = vpop.eup %508  ;;  %vm212_vm0 = vcmp.lt.f32.partialorder %v413_v41, %v507_v43 }
 0x113   :  { %v511_v47 = vpop.eup %510  ;;  %vm210_vm2 = vcmp.lt.f32.partialorder %v409_v44, %v509_v46 }
 0x114   :  { %v513_v48 = vpop.eup %512  ;;  %vm213_vm1 = vcmp.lt.f32.partialorder %v414_v42, %v511_v47 }
 0x115   :  { %vm211_vm3 = vcmp.lt.f32.partialorder %v410_v45, %v513_v48  ;;  %vm401_vm4 = vmpackc.low %vm213_vm1, %vm212_vm0 }
 0x116   :  { %vm399_vm5 = vmpackc.low %vm211_vm3, %vm210_vm2 }
 0x117   :  { %472 = vmatprep.mubr.msk.bf16.mxu1 %vm399_vm5, %v554_v49 }
 0x118   :  { %473 = vmatmul.mubr.msk.bf16.vlgmr.msra.gmra.mrb[0].mxu1 %vm401_vm4, %v554_v49 }
 0x1eb   :  { %v474_v51 = vpop.f32.mrb[0].mxu1 }
 0x1ec   :  { %v321_v52 = vadd.f32 %v474_v51, %v390_v50  ;;  %v312_v53 = vpop.f32.mrb[1].mxu1 }
 0x1ed   :  { %v313_v54 = vadd.f32 %v390_v50, %v312_v53  ;;  %v475_v55 = vpop.f32.mrb[2].mxu1 }
 0x1ee   :  { %v405_v56 = vmul.f32 -1.442695, %v321_v52  ;;  %v324_v57 = vadd.f32 %v475_v55, %v390_v50  ;;  %v315_v58 = vpop.f32.mrb[3].mxu1 }
 0x1ef   :  { %v403_v59 = vmul.f32 -1.442695, %v313_v54  ;;  %v316_v60 = vadd.f32 %v390_v50, %v315_v58 }
 0x1f0   :  { %514 = vpow2.f32 %v405_v56  ;;  %v406_v61 = vmul.f32 -1.442695, %v324_v57 }
 0x1f1   :  { %516 = vpow2.f32 %v403_v59  ;;  %v404_v62 = vmul.f32 -1.442695, %v316_v60 }
 0x1f2   :  { %518 = vpow2.f32 %v406_v61 }
 0x1f3   :  { %520 = vpow2.f32 %v404_v62 }
 0x1fa   :  { %v515_v63 = vpop.eup %514 }
 0x1fb   :  { %v517_v0 = vpop.eup %516  ;;  %v341_v1 = vadd.f32 1.0, %v515_v63 }
 0x1fc   :  { %v519_v2 = vpop.eup %518  ;;  %v339_v3 = vadd.f32 1.0, %v517_v0 }
 0x1fd   :  { %v521_v4 = vpop.eup %520  ;;  %522 = vrcp.f32 %v341_v1  ;;  %v342_v5 = vadd.f32 1.0, %v519_v2 }
 0x1fe   :  { %524 = vrcp.f32 %v339_v3  ;;  %v340_v6 = vadd.f32 1.0, %v521_v4 }
 0x1ff   :  { %526 = vrcp.f32 %v342_v5 }
 0x200   :  { %528 = vrcp.f32 %v340_v6 }
 0x207   :  { %v523_v7 = vpop.eup %522 }
 0x208   :  { %v525_v8 = vpop.eup %524  ;;  %353 = vst [vmem:[#allocation2 + $0x10] sm:$0xff] %v523_v7 }
 0x209   :  { %v527_v9 = vpop.eup %526  ;;  %351 = vst [vmem:[#allocation2] sm:$0xff] %v525_v8 }
 0x20a   :  { %v529_v10 = vpop.eup %528  ;;  %354 = vst [vmem:[#allocation2 + $0x18] sm:$0xff] %v527_v9 }
 0x20b   :  { %352 = vst [vmem:[#allocation2 + $0x8] sm:$0xff] %v529_v10 }
 0x20c   :  { %541 = shalt.err (!%p538_p4)
}
 0x20d   :  { %s542_s16 = scalar_lea.hbm %s677_s6, 512 }
 0x20e   :  { %p543_p5 = scmp.ne.s32.totalorder %s677_s6, %s542_s16  ;;  %p546_p6 = scmp.lt.u32.totalorder %s542_s16, %s677_s6 }
 0x210   :  { %p548_p7 = pnand %p546_p6, %p543_p5 }
 0x212   :  { %551 = shalt.err (!%p548_p7)
}
 0x213   :  { %s556_s2 = smov 128   ;;  %s557_s21 = smov 8  }
 0x214   :  { %366 = dma.vmem_to_hbm [thread:$0]  %s361_s5, 512, %s677_s6, [#allocation3], %s556_s2, %s556_s2, %s557_s21  }
 0x215   :  { %552 = dma.done.wait [#allocation3], 512  }
 0x216   :  { %553 = vsyncadd [#allocation3], 4294966784 }
 0x217   :  { %370 = vsyncpa [#allocation3], 1 }

</bundles_post_ra>
